<compile_context>
chip_gen: v7x
topology: tpu7x:2x2x1
jax: 0.10.0
libtpu: 0.0.40
codegen_flags: <defaults>
</compile_context>

<pallas_src>
import jax
import jax.numpy as jnp
from jax import lax
from jax.experimental import pallas as pl
from jax.experimental.pallas import tpu as pltpu

BT_MAX = 32  # conv/linear batch tile; sized for v7x 64 MiB VMEM (raise to 64-128 on v5e/v6e)


# ----------------------------- Pallas kernels ------------------------------

def conv_relu_pool_kernel(p_ref, w_ref, b_ref, o_ref):
    """Fused conv(5x5,'same') + bias + ReLU + 2x2 max-pool for a tile of Bt images.

    p_ref: (1, 4, K, Bt*S) bf16 im2col patches.  Group g=2*dy+dx holds the patches of conv
           outputs at offset (dy,dx) inside each 2x2 pool window; K = Cin*5*5 taps (ci,kh,kw)
           in sublanes, Bt*S pooled positions (image-major) in lanes.
    w_ref: (Cout, K) bf16 flattened conv weight (PyTorch weight.reshape(Cout,-1)).
    b_ref: (Cout, 1) f32 bias.
    o_ref: (1, Cout, Bt*S) pooled output (lane-dense store).
    """
    w = w_ref[...]                                                   # (Cout, K)
    # One MXU matmul per pool-window offset; running max == 2x2 max-pool.
    m = jnp.dot(w, p_ref[0, 0], preferred_element_type=jnp.float32)
    for g in range(1, 4):                                            # static unroll
        m = jnp.maximum(
            m, jnp.dot(w, p_ref[0, g], preferred_element_type=jnp.float32))
    # Shared bias + monotone ReLU commute with the max, so bias/ReLU after the max is exact.
    o_ref[0] = jnp.maximum(m + b_ref[...], 0.0).astype(o_ref.dtype)


def linear_kernel(x_ref, w_ref, b_ref, o_ref):
    """x: (Bt, F) f32, w: (F, Npad) f32 (pre-transposed, zero-padded), b: (1, Npad), o: (Bt, Npad)."""
    o_ref[...] = jnp.dot(x_ref[...], w_ref[...],
                         preferred_element_type=jnp.float32) + b_ref[...]


# ----------------------------- wrappers -------------------------------------

def conv_relu_pool(patches, w_mat, bias_col, out_dtype):
    """patches: (nT, 4, K, L) bf16 with L = Bt*Hp*Wp; w_mat: (Cout, K) bf16; bias: (Cout,1) f32."""
    nT, _, K, L = patches.shape
    Cout = w_mat.shape[0]
    out_isz = jnp.dtype(out_dtype).itemsize
    cost = pl.CostEstimate(
        flops=2 * Cout * K * 4 * L * nT,
        transcendentals=0,
        bytes_accessed=(patches.size * 2 + w_mat.size * 2 + bias_col.size * 4
                        + nT * Cout * L * out_isz),
    )
    return pl.pallas_call(
        conv_relu_pool_kernel,
        out_shape=jax.ShapeDtypeStruct((nT, Cout, L), out_dtype),
        grid=(nT,),
        in_specs=[
            pl.BlockSpec((1, 4, K, L), lambda t: (t, 0, 0, 0)),
            pl.BlockSpec((Cout, K), lambda t: (0, 0)),
            pl.BlockSpec((Cout, 1), lambda t: (0, 0)),
        ],
        out_specs=pl.BlockSpec((1, Cout, L), lambda t: (t, 0, 0)),
        compiler_params=pltpu.CompilerParams(
            dimension_semantics=("parallel",),          # shard batch tiles across v7x TCs
            vmem_limit_bytes=32 * 1024 * 1024),
        cost_estimate=cost,
    )(patches, w_mat, bias_col)


def linear(x, w_t, bias_row, bt):
    """x: (B, F) f32; w_t: (F, Npad) f32 pre-transposed/padded; bias_row: (1, Npad) f32."""
    B, F = x.shape
    N = w_t.shape[1]
    cost = pl.CostEstimate(
        flops=2 * B * F * N,
        transcendentals=0,
        bytes_accessed=(x.size + w_t.size + bias_row.size + B * N) * 4,
    )
    return pl.pallas_call(
        linear_kernel,
        out_shape=jax.ShapeDtypeStruct((B, N), jnp.float32),
        grid=(B // bt,),
        in_specs=[
            pl.BlockSpec((bt, F), lambda i: (i, 0)),
            pl.BlockSpec((F, N), lambda i: (0, 0)),
            pl.BlockSpec((1, N), lambda i: (0, 0)),
        ],
        out_specs=pl.BlockSpec((bt, N), lambda i: (i, 0)),
        compiler_params=pltpu.CompilerParams(
            dimension_semantics=("parallel",),
            vmem_limit_bytes=32 * 1024 * 1024),
        cost_estimate=cost,
    )(x, w_t, bias_row)


# ----------------------------- JAX glue --------------------------------------

def im2col_pooled_packed(x_nhwc, bt, k=5, pad=2):
    """'same' conv patches, grouped by 2x2-pool offset, with a batch tile packed into lanes.

    x_nhwc: (B_pad, H, W, C) bf16 with B_pad % bt == 0.
    Returns (nT, 4, K, bt*Hp*Wp) bf16, K = C*k*k taps ordered (ci, kh, kw) so it matches the
    PyTorch conv weight flattened as weight.reshape(Cout, -1).  Lane index = b_in_tile*S + i*Wp + j.
    """
    B, H, W, C = x_nhwc.shape
    Hp, Wp = H // 2, W // 2
    K = C * k * k
    pat = lax.conv_general_dilated_patches(
        x_nhwc, filter_shape=(k, k), window_strides=(1, 1),
        padding=((pad, pad), (pad, pad)),
        dimension_numbers=("NHWC", "HWIO", "NHWC"))                  # (B, H, W, K), (ci,kh,kw)
    g = jnp.stack([pat[:, dy::2, dx::2, :] for dy in range(2) for dx in range(2)],
                  axis=1)                                            # (B, 4, Hp, Wp, K)
    nT = B // bt
    g = g.reshape(nT, bt, 4, Hp, Wp, K)
    g = jnp.transpose(g, (0, 2, 5, 1, 3, 4))                         # (nT, 4, K, bt, Hp, Wp)
    return g.reshape(nT, 4, K, bt * Hp * Wp)


def _unpack_pooled(o, bt, Hp, Wp):
    """(nT, Cout, bt*Hp*Wp) -> (B_pad, Hp, Wp, Cout) NHWC for the next layer's im2col."""
    nT, Cout, _ = o.shape
    o = o.reshape(nT, Cout, bt, Hp, Wp)
    return jnp.transpose(o, (0, 2, 3, 4, 1)).reshape(nT * bt, Hp, Wp, Cout)


def cnn_forward(x_nchw, w1, b1, w2, b2, wl, bl, bt_max=BT_MAX):
    """Mirrors CNN.forward: returns (logits (B,10), flattened NCHW features (B, 32*7*7))."""
    B = x_nchw.shape[0]
    bt = min(bt_max, B)
    b_pad = -(-B // bt) * bt

    x = jnp.transpose(x_nchw, (0, 2, 3, 1)).astype(jnp.bfloat16)      # NHWC (B,28,28,1) bf16
    if b_pad != B:
        x = jnp.pad(x, ((0, b_pad - B), (0, 0), (0, 0), (0, 0)))

    # conv1 block: Conv2d(1,16,5,1,2) + ReLU + MaxPool2d(2)  -> bf16 pooled map
    p1 = im2col_pooled_packed(x, bt)                                  # (nT, 4, 25, bt*196)
    w1m = w1.reshape(16, 25).astype(jnp.bfloat16)
    h1 = conv_relu_pool(p1, w1m, b1.reshape(16, 1), jnp.bfloat16)     # (nT, 16, bt*196)
    h1 = _unpack_pooled(h1, bt, 14, 14)                               # (B_pad, 14, 14, 16) bf16

    # conv2 block: Conv2d(16,32,5,1,2) + ReLU + MaxPool2d(2)
    p2 = im2col_pooled_packed(h1, bt)                                 # (nT, 4, 400, bt*49)
    w2m = w2.reshape(32, 400).astype(jnp.bfloat16)
    h2 = conv_relu_pool(p2, w2m, b2.reshape(32, 1), jnp.float32)      # (nT, 32, bt*49) f32

    # x.view(B, -1): flatten in PyTorch NCHW order (c, h, w)
    nT = h2.shape[0]
    feats = jnp.transpose(h2.reshape(nT, 32, bt, 7, 7),
                          (0, 2, 1, 3, 4)).reshape(b_pad, 32 * 7 * 7)

    # out = self.out(x): pre-transpose W to (F, N) and zero-pad N 10->128 (lane-dense store).
    F = 32 * 7 * 7
    wl_t = jnp.zeros((F, 128), jnp.float32).at[:, :10].set(wl.T)
    bl_p = jnp.zeros((1, 128), jnp.float32).at[:, :10].set(bl.reshape(1, 10))
    logits = linear(feats, wl_t, bl_p, bt)[:, :10]

    return logits[:B], feats[:B]


# ----------------------------- main ------------------------------------------

if __name__ == "__main__":
    key = jax.random.PRNGKey(0)
    kx, k1, kb1, k2, kb2, kl, kbl = jax.random.split(key, 7)

    # MNIST-shaped input implied by the module (Linear expects 32*7*7 => 28x28 input).
    x = jax.random.normal(kx, (2, 1, 28, 28), dtype=jnp.float32)

    # Deterministic synthetic parameters in PyTorch layouts.
    w1 = jax.random.normal(k1, (16, 1, 5, 5), dtype=jnp.float32) * 0.10     # conv1.weight
    b1 = jax.random.normal(kb1, (16,), dtype=jnp.float32) * 0.10            # conv1.bias
    w2 = jax.random.normal(k2, (32, 16, 5, 5), dtype=jnp.float32) * 0.05    # conv2.weight
    b2 = jax.random.normal(kb2, (32,), dtype=jnp.float32) * 0.05            # conv2.bias
    wl = jax.random.normal(kl, (10, 32 * 7 * 7), dtype=jnp.float32) * 0.02  # out.weight
    bl = jax.random.normal(kbl, (10,), dtype=jnp.float32) * 0.02            # out.bias

    logits, feats = jax.jit(cnn_forward)(x, w1, b1, w2, b2, wl, bl)
    jax.block_until_ready((logits, feats))
    assert logits.shape == (2, 10) and feats.shape == (2, 32 * 7 * 7)
    print("KERNEL_OK")
</pallas_src>

<mosaic_0001>
module attributes {stable_mosaic.version = 11 : i64} {
  func.func @conv_relu_pool_kernel(%arg0: i32, %arg1: memref<1x4x25x392xbf16, #tpu.memory_space<vmem>>, %arg2: memref<16x25xbf16, #tpu.memory_space<vmem>>, %arg3: memref<16x1xf32, #tpu.memory_space<vmem>>, %arg4: memref<1x16x392xbf16, #tpu.memory_space<vmem>>) attributes {dimension_semantics = [#tpu.dimension_semantics<parallel>], iteration_bounds = array<i64: 1>, scalar_prefetch = 0 : i64, scratch_operands = 0 : i64, tpu.core_type = #tpu.core_type<tc>, window_params = [{transform_indices = @transform_0, window_bounds = array<i64: 1, 4, 25, 392>}, {pipeline_mode = #tpu.pipeline_mode<synchronous>, transform_indices = @transform_1, window_bounds = array<i64: 16, 25>}, {pipeline_mode = #tpu.pipeline_mode<synchronous>, transform_indices = @transform_2, window_bounds = array<i64: 16, 1>}, {transform_indices = @transform_3, window_bounds = array<i64: 1, 16, 392>}]} {
    %c0 = arith.constant 0 : index
    %c0_0 = arith.constant 0 : index
    %0 = vector.load %arg2[%c0, %c0_0] : memref<16x25xbf16, #tpu.memory_space<vmem>>, vector<16x25xbf16>
    %c0_1 = arith.constant 0 : index
    %c0_2 = arith.constant 0 : index
    %c0_3 = arith.constant 0 : index
    %c0_4 = arith.constant 0 : index
    %1 = vector.load %arg1[%c0_1, %c0_2, %c0_3, %c0_4] : memref<1x4x25x392xbf16, #tpu.memory_space<vmem>>, vector<1x1x25x392xbf16>
    %2 = vector.shape_cast %1 : vector<1x1x25x392xbf16> to vector<25x392xbf16>
    %cst = arith.constant dense<0.000000e+00> : vector<16x392xf32>
    %3 = tpu.matmul %0, %2, %cst {dimension_numbers = #tpu.dot_dimension_numbers<[1], [0], [0], [1], [0, 0, 1, 1], [], []>} : vector<16x25xbf16>, vector<25x392xbf16>, vector<16x392xf32> -> vector<16x392xf32>
    %c0_5 = arith.constant 0 : index
    %c1 = arith.constant 1 : index
    %c0_6 = arith.constant 0 : index
    %c0_7 = arith.constant 0 : index
    %4 = vector.load %arg1[%c0_5, %c1, %c0_6, %c0_7] : memref<1x4x25x392xbf16, #tpu.memory_space<vmem>>, vector<1x1x25x392xbf16>
    %5 = vector.shape_cast %4 : vector<1x1x25x392xbf16> to vector<25x392xbf16>
    %cst_8 = arith.constant dense<0.000000e+00> : vector<16x392xf32>
    %6 = tpu.matmul %0, %5, %cst_8 {dimension_numbers = #tpu.dot_dimension_numbers<[1], [0], [0], [1], [0, 0, 1, 1], [], []>} : vector<16x25xbf16>, vector<25x392xbf16>, vector<16x392xf32> -> vector<16x392xf32>
    %7 = arith.maximumf %3, %6 : vector<16x392xf32>
    %c0_9 = arith.constant 0 : index
    %c2 = arith.constant 2 : index
    %c0_10 = arith.constant 0 : index
    %c0_11 = arith.constant 0 : index
    %8 = vector.load %arg1[%c0_9, %c2, %c0_10, %c0_11] : memref<1x4x25x392xbf16, #tpu.memory_space<vmem>>, vector<1x1x25x392xbf16>
    %9 = vector.shape_cast %8 : vector<1x1x25x392xbf16> to vector<25x392xbf16>
    %cst_12 = arith.constant dense<0.000000e+00> : vector<16x392xf32>
    %10 = tpu.matmul %0, %9, %cst_12 {dimension_numbers = #tpu.dot_dimension_numbers<[1], [0], [0], [1], [0, 0, 1, 1], [], []>} : vector<16x25xbf16>, vector<25x392xbf16>, vector<16x392xf32> -> vector<16x392xf32>
    %11 = arith.maximumf %7, %10 : vector<16x392xf32>
    %c0_13 = arith.constant 0 : index
    %c3 = arith.constant 3 : index
    %c0_14 = arith.constant 0 : index
    %c0_15 = arith.constant 0 : index
    %12 = vector.load %arg1[%c0_13, %c3, %c0_14, %c0_15] : memref<1x4x25x392xbf16, #tpu.memory_space<vmem>>, vector<1x1x25x392xbf16>
    %13 = vector.shape_cast %12 : vector<1x1x25x392xbf16> to vector<25x392xbf16>
    %cst_16 = arith.constant dense<0.000000e+00> : vector<16x392xf32>
    %14 = tpu.matmul %0, %13, %cst_16 {dimension_numbers = #tpu.dot_dimension_numbers<[1], [0], [0], [1], [0, 0, 1, 1], [], []>} : vector<16x25xbf16>, vector<25x392xbf16>, vector<16x392xf32> -> vector<16x392xf32>
    %15 = arith.maximumf %11, %14 : vector<16x392xf32>
    %c0_17 = arith.constant 0 : index
    %c0_18 = arith.constant 0 : index
    %16 = vector.load %arg3[%c0_17, %c0_18] : memref<16x1xf32, #tpu.memory_space<vmem>>, vector<16x1xf32>
    %17 = vector.broadcast %16 : vector<16x1xf32> to vector<16x392xf32>
    %18 = arith.addf %15, %17 : vector<16x392xf32>
    %cst_19 = arith.constant 0.000000e+00 : f32
    %19 = vector.broadcast %cst_19 : f32 to vector<16x392xf32>
    %20 = arith.maximumf %18, %19 : vector<16x392xf32>
    %21 = arith.truncf %20 : vector<16x392xf32> to vector<16x392xbf16>
    %c0_20 = arith.constant 0 : index
    %c0_21 = arith.constant 0 : index
    %c0_22 = arith.constant 0 : index
    %22 = vector.load %arg4[%c0_20, %c0_21, %c0_22] : memref<1x16x392xbf16, #tpu.memory_space<vmem>>, vector<1x16x392xbf16>
    %23 = vector.shape_cast %22 : vector<1x16x392xbf16> to vector<16x392xbf16>
    %24 = vector.shape_cast %21 : vector<16x392xbf16> to vector<1x16x392xbf16>
    tpu.vector_store %arg4[%c0_20, %c0_21, %c0_22], %24 {strides = array<i32>} : memref<1x16x392xbf16, #tpu.memory_space<vmem>>, vector<1x16x392xbf16>,
    return
  }
  func.func @transform_0(%arg0: i32) -> (i32, i32, i32, i32) {
    %c0_i32 = arith.constant 0 : i32
    %c0_i32_0 = arith.constant 0 : i32
    %c0_i32_1 = arith.constant 0 : i32
    %c0_i32_2 = arith.constant 0 : i32
    return %arg0, %c0_i32, %c0_i32_0, %c0_i32_1 : i32, i32, i32, i32
  }
  func.func @transform_1(%arg0: i32) -> (i32, i32) {
    %c0_i32 = arith.constant 0 : i32
    %c0_i32_0 = arith.constant 0 : i32
    %c0_i32_1 = arith.constant 0 : i32
    return %c0_i32, %c0_i32_0 : i32, i32
  }
  func.func @transform_2(%arg0: i32) -> (i32, i32) {
    %c0_i32 = arith.constant 0 : i32
    %c0_i32_0 = arith.constant 0 : i32
    %c0_i32_1 = arith.constant 0 : i32
    return %c0_i32, %c0_i32_0 : i32, i32
  }
  func.func @transform_3(%arg0: i32) -> (i32, i32, i32) {
    %c0_i32 = arith.constant 0 : i32
    %c0_i32_0 = arith.constant 0 : i32
    %c0_i32_1 = arith.constant 0 : i32
    return %arg0, %c0_i32, %c0_i32_0 : i32, i32, i32
  }
}

module attributes {stable_mosaic.version = 11 : i64} {
  func.func @conv_relu_pool_kernel(%arg0: i32, %arg1: memref<1x4x400x98xbf16, #tpu.memory_space<vmem>>, %arg2: memref<32x400xbf16, #tpu.memory_space<vmem>>, %arg3: memref<32x1xf32, #tpu.memory_space<vmem>>, %arg4: memref<1x32x98xf32, #tpu.memory_space<vmem>>) attributes {dimension_semantics = [#tpu.dimension_semantics<parallel>], iteration_bounds = array<i64: 1>, scalar_prefetch = 0 : i64, scratch_operands = 0 : i64, tpu.core_type = #tpu.core_type<tc>, window_params = [{transform_indices = @transform_0, window_bounds = array<i64: 1, 4, 400, 98>}, {pipeline_mode = #tpu.pipeline_mode<synchronous>, transform_indices = @transform_1, window_bounds = array<i64: 32, 400>}, {pipeline_mode = #tpu.pipeline_mode<synchronous>, transform_indices = @transform_2, window_bounds = array<i64: 32, 1>}, {transform_indices = @transform_3, window_bounds = array<i64: 1, 32, 98>}]} {
    %c0 = arith.constant 0 : index
    %c0_0 = arith.constant 0 : index
    %0 = vector.load %arg2[%c0, %c0_0] : memref<32x400xbf16, #tpu.memory_space<vmem>>, vector<32x400xbf16>
    %c0_1 = arith.constant 0 : index
    %c0_2 = arith.constant 0 : index
    %c0_3 = arith.constant 0 : index
    %c0_4 = arith.constant 0 : index
    %1 = vector.load %arg1[%c0_1, %c0_2, %c0_3, %c0_4] : memref<1x4x400x98xbf16, #tpu.memory_space<vmem>>, vector<1x1x400x98xbf16>
    %2 = vector.shape_cast %1 : vector<1x1x400x98xbf16> to vector<400x98xbf16>
    %cst = arith.constant dense<0.000000e+00> : vector<32x98xf32>
    %3 = tpu.matmul %0, %2, %cst {dimension_numbers = #tpu.dot_dimension_numbers<[1], [0], [0], [1], [0, 0, 1, 1], [], []>} : vector<32x400xbf16>, vector<400x98xbf16>, vector<32x98xf32> -> vector<32x98xf32>
    %c0_5 = arith.constant 0 : index
    %c1 = arith.constant 1 : index
    %c0_6 = arith.constant 0 : index
    %c0_7 = arith.constant 0 : index
    %4 = vector.load %arg1[%c0_5, %c1, %c0_6, %c0_7] : memref<1x4x400x98xbf16, #tpu.memory_space<vmem>>, vector<1x1x400x98xbf16>
    %5 = vector.shape_cast %4 : vector<1x1x400x98xbf16> to vector<400x98xbf16>
    %cst_8 = arith.constant dense<0.000000e+00> : vector<32x98xf32>
    %6 = tpu.matmul %0, %5, %cst_8 {dimension_numbers = #tpu.dot_dimension_numbers<[1], [0], [0], [1], [0, 0, 1, 1], [], []>} : vector<32x400xbf16>, vector<400x98xbf16>, vector<32x98xf32> -> vector<32x98xf32>
    %7 = arith.maximumf %3, %6 : vector<32x98xf32>
    %c0_9 = arith.constant 0 : index
    %c2 = arith.constant 2 : index
    %c0_10 = arith.constant 0 : index
    %c0_11 = arith.constant 0 : index
    %8 = vector.load %arg1[%c0_9, %c2, %c0_10, %c0_11] : memref<1x4x400x98xbf16, #tpu.memory_space<vmem>>, vector<1x1x400x98xbf16>
    %9 = vector.shape_cast %8 : vector<1x1x400x98xbf16> to vector<400x98xbf16>
    %cst_12 = arith.constant dense<0.000000e+00> : vector<32x98xf32>
    %10 = tpu.matmul %0, %9, %cst_12 {dimension_numbers = #tpu.dot_dimension_numbers<[1], [0], [0], [1], [0, 0, 1, 1], [], []>} : vector<32x400xbf16>, vector<400x98xbf16>, vector<32x98xf32> -> vector<32x98xf32>
    %11 = arith.maximumf %7, %10 : vector<32x98xf32>
    %c0_13 = arith.constant 0 : index
    %c3 = arith.constant 3 : index
    %c0_14 = arith.constant 0 : index
    %c0_15 = arith.constant 0 : index
    %12 = vector.load %arg1[%c0_13, %c3, %c0_14, %c0_15] : memref<1x4x400x98xbf16, #tpu.memory_space<vmem>>, vector<1x1x400x98xbf16>
    %13 = vector.shape_cast %12 : vector<1x1x400x98xbf16> to vector<400x98xbf16>
    %cst_16 = arith.constant dense<0.000000e+00> : vector<32x98xf32>
    %14 = tpu.matmul %0, %13, %cst_16 {dimension_numbers = #tpu.dot_dimension_numbers<[1], [0], [0], [1], [0, 0, 1, 1], [], []>} : vector<32x400xbf16>, vector<400x98xbf16>, vector<32x98xf32> -> vector<32x98xf32>
    %15 = arith.maximumf %11, %14 : vector<32x98xf32>
    %c0_17 = arith.constant 0 : index
    %c0_18 = arith.constant 0 : index
    %16 = vector.load %arg3[%c0_17, %c0_18] : memref<32x1xf32, #tpu.memory_space<vmem>>, vector<32x1xf32>
    %17 = vector.broadcast %16 : vector<32x1xf32> to vector<32x98xf32>
    %18 = arith.addf %15, %17 : vector<32x98xf32>
    %cst_19 = arith.constant 0.000000e+00 : f32
    %19 = vector.broadcast %cst_19 : f32 to vector<32x98xf32>
    %20 = arith.maximumf %18, %19 : vector<32x98xf32>
    %c0_20 = arith.constant 0 : index
    %c0_21 = arith.constant 0 : index
    %c0_22 = arith.constant 0 : index
    %21 = vector.load %arg4[%c0_20, %c0_21, %c0_22] : memref<1x32x98xf32, #tpu.memory_space<vmem>>, vector<1x32x98xf32>
    %22 = vector.shape_cast %21 : vector<1x32x98xf32> to vector<32x98xf32>
    %23 = vector.shape_cast %20 : vector<32x98xf32> to vector<1x32x98xf32>
    tpu.vector_store %arg4[%c0_20, %c0_21, %c0_22], %23 {strides = array<i32>} : memref<1x32x98xf32, #tpu.memory_space<vmem>>, vector<1x32x98xf32>,
    return
  }
  func.func @transform_0(%arg0: i32) -> (i32, i32, i32, i32) {
    %c0_i32 = arith.constant 0 : i32
    %c0_i32_0 = arith.constant 0 : i32
    %c0_i32_1 = arith.constant 0 : i32
    %c0_i32_2 = arith.constant 0 : i32
    return %arg0, %c0_i32, %c0_i32_0, %c0_i32_1 : i32, i32, i32, i32
  }
  func.func @transform_1(%arg0: i32) -> (i32, i32) {
    %c0_i32 = arith.constant 0 : i32
    %c0_i32_0 = arith.constant 0 : i32
    %c0_i32_1 = arith.constant 0 : i32
    return %c0_i32, %c0_i32_0 : i32, i32
  }
  func.func @transform_2(%arg0: i32) -> (i32, i32) {
    %c0_i32 = arith.constant 0 : i32
    %c0_i32_0 = arith.constant 0 : i32
    %c0_i32_1 = arith.constant 0 : i32
    return %c0_i32, %c0_i32_0 : i32, i32
  }
  func.func @transform_3(%arg0: i32) -> (i32, i32, i32) {
    %c0_i32 = arith.constant 0 : i32
    %c0_i32_0 = arith.constant 0 : i32
    %c0_i32_1 = arith.constant 0 : i32
    return %arg0, %c0_i32, %c0_i32_0 : i32, i32, i32
  }
}

module attributes {stable_mosaic.version = 11 : i64} {
  func.func @linear_kernel(%arg0: i32, %arg1: memref<2x1568xf32, #tpu.memory_space<vmem>>, %arg2: memref<1568x128xf32, #tpu.memory_space<vmem>>, %arg3: memref<1x128xf32, #tpu.memory_space<vmem>>, %arg4: memref<2x128xf32, #tpu.memory_space<vmem>>) attributes {dimension_semantics = [#tpu.dimension_semantics<parallel>], iteration_bounds = array<i64: 1>, scalar_prefetch = 0 : i64, scratch_operands = 0 : i64, tpu.core_type = #tpu.core_type<tc>, window_params = [{transform_indices = @transform_0, window_bounds = array<i64: 2, 1568>}, {pipeline_mode = #tpu.pipeline_mode<synchronous>, transform_indices = @transform_1, window_bounds = array<i64: 1568, 128>}, {pipeline_mode = #tpu.pipeline_mode<synchronous>, transform_indices = @transform_2, window_bounds = array<i64: 1, 128>}, {transform_indices = @transform_3, window_bounds = array<i64: 2, 128>}]} {
    %c0 = arith.constant 0 : index
    %c0_0 = arith.constant 0 : index
    %0 = vector.load %arg1[%c0, %c0_0] : memref<2x1568xf32, #tpu.memory_space<vmem>>, vector<2x1568xf32>
    %c0_1 = arith.constant 0 : index
    %c0_2 = arith.constant 0 : index
    %1 = vector.load %arg2[%c0_1, %c0_2] : memref<1568x128xf32, #tpu.memory_space<vmem>>, vector<1568x128xf32>
    %cst = arith.constant dense<0.000000e+00> : vector<2x128xf32>
    %2 = tpu.matmul %0, %1, %cst {dimension_numbers = #tpu.dot_dimension_numbers<[1], [0], [0], [1], [0, 0, 1, 1], [], []>} : vector<2x1568xf32>, vector<1568x128xf32>, vector<2x128xf32> -> vector<2x128xf32>
    %c0_3 = arith.constant 0 : index
    %c0_4 = arith.constant 0 : index
    %3 = vector.load %arg3[%c0_3, %c0_4] : memref<1x128xf32, #tpu.memory_space<vmem>>, vector<1x128xf32>
    %4 = vector.broadcast %3 : vector<1x128xf32> to vector<2x128xf32>
    %5 = arith.addf %2, %4 : vector<2x128xf32>
    %c0_5 = arith.constant 0 : index
    %c0_6 = arith.constant 0 : index
    %6 = vector.load %arg4[%c0_5, %c0_6] : memref<2x128xf32, #tpu.memory_space<vmem>>, vector<2x128xf32>
    tpu.vector_store %arg4[%c0_5, %c0_6], %5 {strides = array<i32>} : memref<2x128xf32, #tpu.memory_space<vmem>>, vector<2x128xf32>,
    return
  }
  func.func @transform_0(%arg0: i32) -> (i32, i32) {
    %c0_i32 = arith.constant 0 : i32
    %c0_i32_0 = arith.constant 0 : i32
    return %arg0, %c0_i32 : i32, i32
  }
  func.func @transform_1(%arg0: i32) -> (i32, i32) {
    %c0_i32 = arith.constant 0 : i32
    %c0_i32_0 = arith.constant 0 : i32
    %c0_i32_1 = arith.constant 0 : i32
    return %c0_i32, %c0_i32_0 : i32, i32
  }
  func.func @transform_2(%arg0: i32) -> (i32, i32) {
    %c0_i32 = arith.constant 0 : i32
    %c0_i32_0 = arith.constant 0 : i32
    %c0_i32_1 = arith.constant 0 : i32
    return %c0_i32, %c0_i32_0 : i32, i32
  }
  func.func @transform_3(%arg0: i32) -> (i32, i32) {
    %c0_i32 = arith.constant 0 : i32
    %c0_i32_0 = arith.constant 0 : i32
    return %arg0, %c0_i32 : i32, i32
  }
}

</mosaic_0001>

<bundles_post_ra>
// kernel: cnn_forward.3
= control target key start
LH: loop header
LB: loop body
LE: loop exit
PB: predicated region body
PF: predicated region fallthrough
CT: control target
= control target key end

     0   :  { %vm70_vm0 = vcmask 1043456   ;;  %vm71_vm1 = vcmask 1044480   ;;  %v812_v1 = vmov 65535   ;;  %v813_v3 = vmov 0   ;;  %s999_s0 = inlined_call_operand.vmem [shape: bf16[1,4,25,392], index: 0, kind: input, shape index: {}]   ;;  %s1000_s1 = inlined_call_operand.vmem [shape: bf16[16,25], index: 1, kind: input, shape index: {}]   ;;  %s1001_s2 = inlined_call_operand.vmem [shape: f32[16,1], index: 2, kind: input, shape index: {}]   ;;  %s1002_s3 = inlined_call_operand.vmem [shape: bf16[1,16,392], index: 3, kind: output, shape index: {}]  }
   0x1   :  { %v763_v0 = vld [vmem:[%s999_s0 + $0x4] ss:$16 sps:$4 sm:$0xff]   ;;  %v72_v2 = vsel %vm70_vm0, 4294967295, %v812_v1  ;;  %118 = vmatprep.mubr.bf16.mxu0 %v813_v3  ;;  %161 = vmatprep.mubr.bf16.mxu1 %v813_v3  ;;  %v765_v4 = vld [vmem:[%s999_s0 + $0xc] ss:$16 sps:$4 sm:$0xff]   ;;  %vm66_vm2 = vcmask 203776  }
   0x2   :  { %762 = vset.pattern.permute.xlu0 %v813_v3  ;;  %86 = vmatprep.subr.bf16.mxu0 %v763_v0  ;;  %v767_v5 = vld [vmem:[%s999_s0] ss:$16 sps:$4 sm:$0xff]   ;;  %v768_v6 = vld [vmem:[%s999_s0 + $0x8] ss:$16 sps:$4 sm:$0xff]   ;;  %v850_v7 = vsel %vm71_vm1, %v72_v2, 0  ;;  %vm678_vm3 = vcmask 64516  }
   0x3   :  { %129 = vmatprep.subr.bf16.mxu1 %v765_v4  ;;  %v769_v8 = vld [vmem:[%s999_s0 + $0x24] ss:$16 sps:$4 sm:$0x1f]   ;;  %87 = vmatpush1.bf16.msra.mxu0 %v767_v5  ;;  %v771_v9 = vld [vmem:[%s999_s0 + $0x2c] ss:$16 sps:$4 sm:$0x1f]   ;;  %vm679_vm4 = vmor %vm678_vm3, %vm70_vm0 }
   0x4   :  { %130 = vmatpush1.bf16.msra.mxu1 %v768_v6  ;;  %v78_v10 = vand.u32 %v769_v8, %v850_v7  ;;  %v773_v11 = vld [vmem:[%s999_s0 + $0x20] ss:$16 sps:$4 sm:$0x1f]   ;;  %v774_v12 = vld [vmem:[%s999_s0 + $0x28] ss:$16 sps:$4 sm:$0x1f]   ;;  %v84_v13 = vand.u32 %v771_v9, %v850_v7 }
   0x5   :  { %v869_v14 = vld [vmem:[%s1000_s1] sm:$0xff]   ;;  %v75_v15 = vand.u32 %v773_v11, %v850_v7  ;;  %v81_v16 = vand.u32 %v774_v12, %v850_v7  ;;  %v779_v19 = vld [vmem:[%s999_s0 + $0x48] ss:$16 sps:$4 sm:$0xff]   ;;  %v781_v20 = vld [vmem:[%s999_s0 + $0x4c] ss:$16 sps:$4 sm:$0xff]  }
   0x6   :  { %88 = vmatprep.subr.bf16.mxu0 %v78_v10  ;;  %v776_v17 = vld [vmem:[%s999_s0 + $0x40] ss:$16 sps:$4 sm:$0xff]   ;;  %v778_v18 = vld [vmem:[%s999_s0 + $0x44] ss:$16 sps:$4 sm:$0xff]   ;;  %131 = vmatprep.subr.bf16.mxu1 %v84_v13  ;;  %v793_v30 = vld [vmem:[%s999_s0 + $0x8c] ss:$16 sps:$4 sm:$0xff]  }
   0x7   :  { %89 = vmatpush1.bf16.msra.mxu0 %v75_v15  ;;  %v782_v21 = vld [vmem:[%s999_s0 + $0x60] ss:$16 sps:$4 sm:$0x1f]   ;;  %v784_v22 = vld [vmem:[%s999_s0 + $0x64] ss:$16 sps:$4 sm:$0x1f]  }
   0x8   :  { %132 = vmatpush1.bf16.msra.mxu1 %v81_v16  ;;  %229 = vmatprep.subr.bf16.mxu0 %v778_v18  ;;  %v785_v23 = vld [vmem:[%s999_s0 + $0x68] ss:$16 sps:$4 sm:$0x1f]   ;;  %v221_v24 = vand.u32 %v784_v22, %v850_v7  ;;  %v787_v25 = vld [vmem:[%s999_s0 + $0x6c] ss:$16 sps:$4 sm:$0x1f]   ;;  %v218_v26 = vand.u32 %v782_v21, %v850_v7 }
   0x9   :  { %272 = vmatprep.subr.bf16.mxu1 %v781_v20  ;;  %v224_v27 = vand.u32 %v785_v23, %v850_v7  ;;  %v227_v28 = vand.u32 %v787_v25, %v850_v7  ;;  %v790_v29 = vld [vmem:[%s999_s0 + $0x84] ss:$16 sps:$4 sm:$0xff]   ;;  %v788_v31 = vld [vmem:[%s999_s0 + $0x80] ss:$16 sps:$4 sm:$0xff]   ;;  %v791_v32 = vld [vmem:[%s999_s0 + $0x88] ss:$16 sps:$4 sm:$0xff]  }
   0xa   :  { %696 = vmatmul.mubr.msk.bf16.vlgmr.msra.gmra.mrb[0].mxu0 %vm66_vm2, %v869_v14  ;;  %v794_v33 = vld [vmem:[%s999_s0 + $0xa0] ss:$16 sps:$4 sm:$0x1f]   ;;  %v796_v34 = vld [vmem:[%s999_s0 + $0xa4] ss:$16 sps:$4 sm:$0x1f]  }
   0xb   :  { %697 = vmatmul.mubr.msk.bf16.vlgmr.msra.gmra.mrb[0].mxu1 %vm66_vm2, %v869_v14  ;;  %230 = vmatpush1.bf16.msra.mxu0 %v776_v17  ;;  %v797_v35 = vld [vmem:[%s999_s0 + $0xa8] ss:$16 sps:$4 sm:$0x1f]   ;;  %v799_v36 = vld [vmem:[%s999_s0 + $0xac] ss:$16 sps:$4 sm:$0x1f]   ;;  %v372_v37 = vand.u32 %v796_v34, %v850_v7  ;;  %v369_v40 = vand.u32 %v794_v33, %v850_v7 }
   0xc   :  { %273 = vmatpush1.bf16.msra.mxu1 %v779_v19  ;;  %231 = vmatprep.subr.bf16.mxu0 %v221_v24  ;;  %v378_v38 = vand.u32 %v799_v36, %v850_v7  ;;  %v802_v39 = vld [vmem:[%s999_s0 + $0xc4] ss:$16 sps:$4 sm:$0xff]   ;;  %v375_v41 = vand.u32 %v797_v35, %v850_v7  ;;  %v805_v42 = vld [vmem:[%s999_s0 + $0xcc] ss:$16 sps:$4 sm:$0xff]   ;;  %v800_v46 = vld [vmem:[%s999_s0 + $0xc0] ss:$16 sps:$4 sm:$0xff]  }
   0xd   :  { %261 = vmatprep.mubr.bf16.mxu0 %v813_v3  ;;  %304 = vmatprep.mubr.bf16.mxu1 %v813_v3  ;;  %v808_v43 = vld [vmem:[%s999_s0 + $0xe4] ss:$16 sps:$4 sm:$0x1f]   ;;  %v811_v45 = vld [vmem:[%s999_s0 + $0xec] ss:$16 sps:$4 sm:$0x1f]  }
   0xe   :  { %274 = vmatprep.subr.bf16.mxu1 %v227_v28  ;;  %v625_v44 = vld [vmem:[%s1001_s2] sm:$0xff]  ;;  %v803_v47 = vld [vmem:[%s999_s0 + $0xc8] ss:$16 sps:$4 sm:$0xff]   ;;  %v523_v50 = vand.u32 %v808_v43, %v850_v7  ;;  %v529_v51 = vand.u32 %v811_v45, %v850_v7 }
   0xf   :  { %232 = vmatpush1.bf16.msra.mxu0 %v218_v26  ;;  %629 = vperm.xlu0 %762, %v625_v44   ;;  %v806_v48 = vld [vmem:[%s999_s0 + $0xe0] ss:$16 sps:$4 sm:$0x1f]   ;;  %v809_v49 = vld [vmem:[%s999_s0 + $0xe8] ss:$16 sps:$4 sm:$0x1f]  }
  0x10   :  { %275 = vmatpush1.bf16.msra.mxu1 %v224_v27  ;;  %380 = vmatprep.subr.bf16.mxu0 %v790_v29  ;;  %v520_v52 = vand.u32 %v806_v48, %v850_v7  ;;  %v526_v53 = vand.u32 %v809_v49, %v850_v7  ;;  %v626_v54 = vld [vmem:[%s1001_s2 + $0x8] sm:$0xff] }
  0x11   :  { %423 = vmatprep.subr.bf16.mxu1 %v793_v30 }
  0x12   :  { %714 = vmatmul.mubr.msk.bf16.vlgmr.msra.gmra.mrb[4].mxu0 %vm66_vm2, %v869_v14 }
  0x13   :  { %715 = vmatmul.mubr.msk.bf16.vlgmr.msra.gmra.mrb[4].mxu1 %vm66_vm2, %v869_v14  ;;  %381 = vmatpush1.bf16.msra.mxu0 %v788_v31 }
  0x14   :  { %424 = vmatpush1.bf16.msra.mxu1 %v791_v32  ;;  %382 = vmatprep.subr.bf16.mxu0 %v372_v37 }
  0x15   :  { %425 = vmatprep.subr.bf16.mxu1 %v378_v38  ;;  %412 = vmatprep.mubr.bf16.mxu0 %v813_v3 }
  0x16   :  { %455 = vmatprep.mubr.bf16.mxu1 %v813_v3  ;;  %634 = vperm.xlu0 %762, %v626_v54  }
  0x17   :  { %383 = vmatpush1.bf16.msra.mxu0 %v369_v40 }
  0x18   :  { %426 = vmatpush1.bf16.msra.mxu1 %v375_v41  ;;  %531 = vmatprep.subr.bf16.mxu0 %v802_v39 }
  0x19   :  { %574 = vmatprep.subr.bf16.mxu1 %v805_v42 }
  0x1a   :  { %732 = vmatmul.mubr.msk.bf16.vlgmr.msra.gmra.mrb[8].mxu0 %vm66_vm2, %v869_v14 }
  0x1b   :  { %733 = vmatmul.mubr.msk.bf16.vlgmr.msra.gmra.mrb[8].mxu1 %vm66_vm2, %v869_v14  ;;  %532 = vmatpush1.bf16.msra.mxu0 %v800_v46 }
  0x1c   :  { %575 = vmatpush1.bf16.msra.mxu1 %v803_v47  ;;  %533 = vmatprep.subr.bf16.mxu0 %v523_v50 }
  0x1d   :  { %576 = vmatprep.subr.bf16.mxu1 %v529_v51  ;;  %563 = vmatprep.mubr.bf16.mxu0 %v813_v3 }
  0x1e   :  { %606 = vmatprep.mubr.bf16.mxu1 %v813_v3 }
  0x1f   :  { %534 = vmatpush1.bf16.msra.mxu0 %v520_v52 }
  0x20   :  { %577 = vmatpush1.bf16.msra.mxu1 %v526_v53 }
  0x22   :  { %750 = vmatmul.mubr.msk.bf16.vlgmr.msra.gmra.mrb[12].mxu0 %vm66_vm2, %v869_v14 }
  0x23   :  { %751 = vmatmul.mubr.msk.bf16.vlgmr.msra.gmra.mrb[12].mxu1 %vm66_vm2, %v869_v14 }
  0x8e   :  { %v630_v31 = vpop.permute.xlu0 %629 }
  0x95   :  { %v635_v50 = vpop.permute.xlu0 %634 }
  0xdd   :  { %v120_v55 = vpop.f32.mrb[0].mxu0 }
  0xde   :  { %v163_v56 = vpop.f32.mrb[0].mxu1  ;;  %v122_v57 = vpop.f32.mrb[1].mxu0 }
  0xdf   :  { %v165_v58 = vpop.f32.mrb[1].mxu1  ;;  %v124_v59 = vpop.f32.mrb[2].mxu0 }
  0xe0   :  { %v167_v60 = vpop.f32.mrb[2].mxu1  ;;  %v126_v61 = vpop.f32.mrb[3].mxu0 }
  0xe1   :  { %v169_v62 = vpop.f32.mrb[3].mxu1 }
  0xe5   :  { %v263_v63 = vpop.f32.mrb[4].mxu0 }
  0xe6   :  { %v306_v0 = vpop.f32.mrb[4].mxu1  ;;  %v315_v1 = vmax.f32 %v120_v55, %v263_v63  ;;  %v265_v3 = vpop.f32.mrb[5].mxu0 }
  0xe7   :  { %v317_v2 = vmax.f32 %v163_v56, %v306_v0  ;;  %v308_v4 = vpop.f32.mrb[5].mxu1  ;;  %v316_v5 = vmax.f32 %v122_v57, %v265_v3  ;;  %v267_v7 = vpop.f32.mrb[6].mxu0 }
  0xe8   :  { %v318_v6 = vmax.f32 %v165_v58, %v308_v4  ;;  %v310_v8 = vpop.f32.mrb[6].mxu1  ;;  %v319_v9 = vmax.f32 %v124_v59, %v267_v7  ;;  %v269_v11 = vpop.f32.mrb[7].mxu0 }
  0xe9   :  { %v321_v10 = vmax.f32 %v167_v60, %v310_v8  ;;  %v312_v12 = vpop.f32.mrb[7].mxu1  ;;  %v320_v13 = vmax.f32 %v126_v61, %v269_v11 }
  0xea   :  { %v322_v14 = vmax.f32 %v169_v62, %v312_v12 }
  0xed   :  { %v414_v15 = vpop.f32.mrb[8].mxu0 }
  0xee   :  { %v457_v16 = vpop.f32.mrb[8].mxu1  ;;  %v466_v17 = vmax.f32 %v315_v1, %v414_v15  ;;  %v416_v19 = vpop.f32.mrb[9].mxu0 }
  0xef   :  { %v468_v18 = vmax.f32 %v317_v2, %v457_v16  ;;  %v459_v20 = vpop.f32.mrb[9].mxu1  ;;  %v467_v21 = vmax.f32 %v316_v5, %v416_v19  ;;  %v418_v23 = vpop.f32.mrb[10].mxu0 }
  0xf0   :  { %v469_v22 = vmax.f32 %v318_v6, %v459_v20  ;;  %v461_v24 = vpop.f32.mrb[10].mxu1  ;;  %v470_v25 = vmax.f32 %v319_v9, %v418_v23  ;;  %v420_v27 = vpop.f32.mrb[11].mxu0 }
  0xf1   :  { %v472_v26 = vmax.f32 %v321_v10, %v461_v24  ;;  %v463_v28 = vpop.f32.mrb[11].mxu1  ;;  %v471_v29 = vmax.f32 %v320_v13, %v420_v27 }
  0xf2   :  { %v473_v30 = vmax.f32 %v322_v14, %v463_v28 }
  0xf5   :  { %v565_v32 = vpop.f32.mrb[12].mxu0 }
  0xf6   :  { %v608_v33 = vpop.f32.mrb[12].mxu1  ;;  %v617_v34 = vmax.f32 %v466_v17, %v565_v32  ;;  %v567_v36 = vpop.f32.mrb[13].mxu0 }
  0xf7   :  { %v619_v35 = vmax.f32 %v468_v18, %v608_v33  ;;  %v610_v37 = vpop.f32.mrb[13].mxu1  ;;  %v618_v38 = vmax.f32 %v467_v21, %v567_v36  ;;  %v569_v40 = vpop.f32.mrb[14].mxu0 }
  0xf8   :  { %v620_v39 = vmax.f32 %v469_v22, %v610_v37  ;;  %v612_v41 = vpop.f32.mrb[14].mxu1  ;;  %v637_v42 = vadd.f32 %v630_v31, %v617_v34  ;;  %v621_v44 = vmax.f32 %v470_v25, %v569_v40  ;;  %v571_v46 = vpop.f32.mrb[15].mxu0 }
  0xf9   :  { %v639_v43 = vadd.f32 %v630_v31, %v619_v35  ;;  %v623_v45 = vmax.f32 %v472_v26, %v612_v41  ;;  %v614_v47 = vpop.f32.mrb[15].mxu1  ;;  %v638_v48 = vadd.f32 %v630_v31, %v618_v38  ;;  %v622_v51 = vmax.f32 %v471_v29, %v571_v46 }
  0xfa   :  { %v640_v49 = vadd.f32 %v630_v31, %v620_v39  ;;  %v624_v52 = vmax.f32 %v473_v30, %v614_v47  ;;  %v645_v53 = vmax.f32 %v637_v42, 0.0  ;;  %v641_v55 = vadd.f32 %v635_v50, %v621_v44 }
  0xfb   :  { %v647_v54 = vmax.f32 %v639_v43, 0.0  ;;  %v643_v56 = vadd.f32 %v635_v50, %v623_v45  ;;  %v646_v57 = vmax.f32 %v638_v48, 0.0  ;;  %v642_v59 = vadd.f32 %v635_v50, %v622_v51 }
  0xfc   :  { %v648_v58 = vmax.f32 %v640_v49, 0.0  ;;  %v644_v60 = vadd.f32 %v635_v50, %v624_v52  ;;  %v649_v61 = vmax.f32 %v641_v55, 0.0 }
  0xfd   :  { %v651_v62 = vmax.f32 %v643_v56, 0.0  ;;  %v756_v63 = vpack.c.bf16 %v646_v57, %v645_v53  ;;  %v650_v1 = vmax.f32 %v642_v59, 0.0 }
  0xfe   :  { %v757_v0 = vpack.c.bf16 %v648_v58, %v647_v54  ;;  %v652_v2 = vmax.f32 %v644_v60, 0.0 }
  0xff   :  { %677 = vst [vmem:[%s1002_s3] sm:$0xff] %v756_v63  ;;  %v758_v3 = vpack.c.bf16 %v650_v1, %v649_v61 }
 0x100   :  { %680 = vst.msk [vmem:[%s1002_s3 + $0x8] sm:$0xff] %vm679_vm4, %v757_v0  ;;  %v759_v4 = vpack.c.bf16 %v652_v2, %v651_v62 }
 0x101   :  { %681 = vst [vmem:[%s1002_s3 + $0x10] sm:$0xff] %v758_v3 }
 0x102   :  { %682 = vst.msk [vmem:[%s1002_s3 + $0x18] sm:$0xff] %vm679_vm4, %v759_v4 }

// kernel: cnn_forward.4
= control target key start
LH: loop header
LB: loop body
LE: loop exit
PB: predicated region body
PF: predicated region fallthrough
CT: control target
= control target key end

     0   :  { %v1809_v0 = vmov 0   ;;  %vm261_vm0 = vcmask 130048   ;;  %vm1307_vm1 = vcmask 801792   ;;  %s2276_s0 = inlined_call_operand.vmem [shape: bf16[1,4,400,98], index: 0, kind: input, shape index: {}]   ;;  %s2277_s1 = inlined_call_operand.vmem [shape: bf16[32,400], index: 1, kind: input, shape index: {}]   ;;  %s2278_s2 = inlined_call_operand.vmem [shape: f32[32,1], index: 2, kind: input, shape index: {}]   ;;  %s2279_s3 = inlined_call_operand.vmem [shape: f32[1,32,98], index: 3, kind: output, shape index: {}]  }
   0x1   :  { %317 = vmatprep.subr.bf16.mxu1 %v1809_v0  ;;  %v1697_v1 = vld [vmem:[%s2276_s0 + $0x40] sm:$0xff]   ;;  %1695 = vset.pattern.permute.xlu0 %v1809_v0  ;;  %v1700_v4 = vld [vmem:[%s2276_s0 + $0x48] sm:$0xff]   ;;  %v1703_v7 = vld [vmem:[%s2276_s0 + $0x50] sm:$0xff]  }
   0x2   :  { %v1698_v2 = vld [vmem:[%s2276_s0 + $0x80] sm:$0xff]   ;;  %1696 = vset.pattern.permute.xlu1 %v1809_v0  ;;  %1582 = vmatprep.subr.bf16.mxu0 %v1697_v1  ;;  %v1701_v5 = vld [vmem:[%s2276_s0 + $0x88] sm:$0xff]   ;;  %v1704_v8 = vld [vmem:[%s2276_s0 + $0x90] sm:$0xff]  }
   0x3   :  { %v1699_v3 = vld [vmem:[%s2276_s0] sm:$0xff]   ;;  %318 = vmatpush1.bf16.msra.mxu1 %v1698_v2  ;;  %v1702_v6 = vld [vmem:[%s2276_s0 + $0x8] sm:$0xff]   ;;  %v1705_v9 = vld [vmem:[%s2276_s0 + $0x10] sm:$0xff]  }
   0x4   :  { %1583 = vmatpush3.bf16.msra.mxu0 %v1699_v3  ;;  %319 = vmatprep.subr.bf16.mxu1 %v1809_v0  ;;  %v1706_v10 = vld [vmem:[%s2276_s0 + $0x58] sm:$0xff]   ;;  %v1709_v13 = vld [vmem:[%s2276_s0 + $0x60] sm:$0xff]   ;;  %v1712_v16 = vld [vmem:[%s2276_s0 + $0x68] sm:$0xff]  }
   0x5   :  { %1584 = vmatprep.subr.bf16.mxu0 %v1700_v4  ;;  %v1707_v11 = vld [vmem:[%s2276_s0 + $0x98] sm:$0xff]   ;;  %v1710_v14 = vld [vmem:[%s2276_s0 + $0xa0] sm:$0xff]   ;;  %v1713_v17 = vld [vmem:[%s2276_s0 + $0xa8] sm:$0xff]  }
   0x6   :  { %v1708_v12 = vld [vmem:[%s2276_s0 + $0x18] sm:$0xff]   ;;  %v1711_v15 = vld [vmem:[%s2276_s0 + $0x20] sm:$0xff]   ;;  %v1714_v18 = vld [vmem:[%s2276_s0 + $0x28] sm:$0xff]  }
   0x7   :  { %320 = vmatpush1.bf16.msra.mxu1 %v1701_v5  ;;  %v1715_v19 = vld [vmem:[%s2276_s0 + $0x70] sm:$0xff]   ;;  %v1718_v23 = vld [vmem:[%s2276_s0 + $0x78] sm:$0xff]   ;;  %v1728_v27 = vld [vmem:[%s2276_s0 + $0x108] sm:$0xff]  }
   0x8   :  { %1585 = vmatpush3.bf16.msra.mxu0 %v1702_v6  ;;  %321 = vmatprep.subr.bf16.mxu1 %v1809_v0  ;;  %v1716_v20 = vld [vmem:[%s2276_s0 + $0xb0] sm:$0xff]   ;;  %v1719_v24 = vld [vmem:[%s2276_s0 + $0xb8] sm:$0xff]   ;;  %v1724_v29 = vld [vmem:[%s2276_s0 + $0xc0] sm:$0xff]  }
   0x9   :  { %1586 = vmatprep.subr.bf16.mxu0 %v1703_v7  ;;  %v1717_v21 = vld [vmem:[%s2276_s0 + $0x30] sm:$0xff]   ;;  %v1917_v25 = vld [vmem:[%s2277_s1 + $0xc] ss:$16 sps:$4 sm:$0xff]   ;;  %v1946_v32 = vld [vmem:[%s2277_s1 + $0x8] ss:$16 sps:$4 sm:$0xff]  }
   0xa   :  { %v1905_v22 = vld [vmem:[%s2277_s1 + $0x4] ss:$16 sps:$4 sm:$0xff]   ;;  %v1720_v26 = vld [vmem:[%s2276_s0 + $0x38] sm:$0xff]   ;;  %1349 = vmatprep.mubr.msk.bf16.mxu1 %vm261_vm0, %v1917_v25  ;;  %v1931_v28 = vld [vmem:[%s2277_s1] ss:$16 sps:$4 sm:$0xff]  }
   0xb   :  { %322 = vmatpush1.bf16.msra.mxu1 %v1704_v8  ;;  %300 = vmatprep.mubr.bf16.mxu0 %v1905_v22  ;;  %v1730_v30 = vld [vmem:[%s2276_s0 + $0xc8] sm:$0xff]   ;;  %v1731_v31 = vld [vmem:[%s2276_s0 + $0x110] sm:$0xff]   ;;  %v1734_v35 = vld [vmem:[%s2276_s0 + $0x118] sm:$0xff]  }
   0xc   :  { %1587 = vmatpush3.bf16.msra.mxu0 %v1705_v9  ;;  %323 = vmatprep.subr.bf16.mxu1 %v1809_v0  ;;  %v1729_v33 = vld [vmem:[%s2276_s0 + $0x148] sm:$0xff]   ;;  %v1733_v34 = vld [vmem:[%s2276_s0 + $0xd0] sm:$0xff]   ;;  %v1736_v37 = vld [vmem:[%s2276_s0 + $0xd8] sm:$0xff]  }
   0xd   :  { %1588 = vmatprep.subr.bf16.mxu0 %v1706_v10  ;;  %v1732_v36 = vld [vmem:[%s2276_s0 + $0x150] sm:$0xff]   ;;  %v1737_v38 = vld [vmem:[%s2276_s0 + $0x120] sm:$0xff]   ;;  %v1735_v39 = vld [vmem:[%s2276_s0 + $0x158] sm:$0xff]  }
   0xe   :  { %v1739_v40 = vld [vmem:[%s2276_s0 + $0xe0] sm:$0xff]   ;;  %v1740_v42 = vld [vmem:[%s2276_s0 + $0x128] sm:$0xff]   ;;  %v1743_v47 = vld [vmem:[%s2276_s0 + $0x130] sm:$0xff]  }
   0xf   :  { %324 = vmatpush1.bf16.msra.mxu1 %v1707_v11  ;;  %v1738_v41 = vld [vmem:[%s2276_s0 + $0x160] sm:$0xff]   ;;  %v1996_v45 = vld [vmem:[%s2277_s1 + $0x2c] ss:$16 sps:$4 sm:$0xff]   ;;  %v2012_v48 = vld [vmem:[%s2277_s1 + $0x28] ss:$16 sps:$4 sm:$0xff]  }
  0x10   :  { %1589 = vmatpush3.bf16.msra.mxu0 %v1708_v12  ;;  %325 = vmatprep.subr.bf16.mxu1 %v1809_v0  ;;  %v1986_v43 = vld [vmem:[%s2277_s1 + $0x24] ss:$16 sps:$4 sm:$0xff]   ;;  %v1991_v44 = vld [vmem:[%s2277_s1 + $0x20] ss:$16 sps:$4 sm:$0xff]   ;;  %v1742_v46 = vld [vmem:[%s2276_s0 + $0xe8] sm:$0xff]  }
  0x11   :  { %1590 = vmatprep.subr.bf16.mxu0 %v1709_v13  ;;  %v1741_v49 = vld [vmem:[%s2276_s0 + $0x168] sm:$0xff]   ;;  %v1745_v50 = vld [vmem:[%s2276_s0 + $0xf0] sm:$0xff]   ;;  %v1751_v51 = vld [vmem:[%s2276_s0 + $0x138] sm:$0xff]  }
  0x12   :  { %v1744_v52 = vld [vmem:[%s2276_s0 + $0x170] sm:$0xff]   ;;  %v1754_v53 = vld [vmem:[%s2276_s0 + $0xf8] sm:$0xff]   ;;  %v1755_v54 = vld [vmem:[%s2276_s0 + $0x140] sm:$0xff]  }
  0x13   :  { %326 = vmatpush1.bf16.msra.mxu1 %v1710_v14  ;;  %v1752_v55 = vld [vmem:[%s2276_s0 + $0x178] sm:$0xff]   ;;  %v1757_v56 = vld [vmem:[%s2276_s0 + $0x100] sm:$0xff]   ;;  %v1759_v57 = vld [vmem:[%s2276_s0 + $0x1d0] sm:$0xff]  }
  0x14   :  { %1591 = vmatpush3.bf16.msra.mxu0 %v1711_v15  ;;  %327 = vmatprep.subr.bf16.mxu1 %v1809_v0  ;;  %v1756_v58 = vld [vmem:[%s2276_s0 + $0x180] sm:$0xff]   ;;  %v1761_v59 = vld [vmem:[%s2276_s0 + $0x190] sm:$0xff]   ;;  %v1762_v60 = vld [vmem:[%s2276_s0 + $0x1d8] sm:$0xff]  }
  0x15   :  { %1592 = vmatprep.subr.bf16.mxu0 %v1712_v16  ;;  %v1758_v61 = vld [vmem:[%s2276_s0 + $0x188] sm:$0xff]   ;;  %v1764_v62 = vld [vmem:[%s2276_s0 + $0x198] sm:$0xff]   ;;  %v1765_v63 = vld [vmem:[%s2276_s0 + $0x1e0] sm:$0xff]  }
  0x16   :  { %v1760_v1 = vld [vmem:[%s2276_s0 + $0x210] sm:$0xff]   ;;  %v1767_v2 = vld [vmem:[%s2276_s0 + $0x1a0] sm:$0xff]   ;;  %v1768_v3 = vld [vmem:[%s2276_s0 + $0x1e8] sm:$0xff]  }
  0x17   :  { %328 = vmatpush1.bf16.msra.mxu1 %v1713_v17  ;;  %v1763_v4 = vld [vmem:[%s2276_s0 + $0x218] sm:$0xff]   ;;  %v1770_v5 = vld [vmem:[%s2276_s0 + $0x1a8] sm:$0xff]   ;;  %v1771_v6 = vld [vmem:[%s2276_s0 + $0x1f0] sm:$0xff]  }
  0x18   :  { %1593 = vmatpush3.bf16.msra.mxu0 %v1714_v18  ;;  %329 = vmatprep.subr.bf16.mxu1 %v1809_v0  ;;  %v1766_v7 = vld [vmem:[%s2276_s0 + $0x220] sm:$0xff]   ;;  %v1773_v8 = vld [vmem:[%s2276_s0 + $0x1b0] sm:$0xff]   ;;  %v1774_v9 = vld [vmem:[%s2276_s0 + $0x1f8] sm:$0xff]  }
  0x19   :  { %1594 = vmatprep.subr.bf16.mxu0 %v1715_v19  ;;  %v1769_v10 = vld [vmem:[%s2276_s0 + $0x228] sm:$0xff]   ;;  %v1776_v11 = vld [vmem:[%s2276_s0 + $0x1b8] sm:$0xff]   ;;  %v1777_v12 = vld [vmem:[%s2276_s0 + $0x200] sm:$0xff]  }
  0x1a   :  { %v1772_v13 = vld [vmem:[%s2276_s0 + $0x230] sm:$0xff]   ;;  %v1779_v14 = vld [vmem:[%s2276_s0 + $0x1c0] sm:$0xff]   ;;  %v1780_v15 = vld [vmem:[%s2276_s0 + $0x208] sm:$0xff]  }
  0x1b   :  { %330 = vmatpush1.bf16.msra.mxu1 %v1716_v20  ;;  %v1775_v16 = vld [vmem:[%s2276_s0 + $0x238] sm:$0xff]   ;;  %v1782_v17 = vld [vmem:[%s2276_s0 + $0x1c8] sm:$0xff]   ;;  %v1778_v19 = vld [vmem:[%s2276_s0 + $0x240] sm:$0xff]  }
  0x1c   :  { %1595 = vmatpush3.bf16.msra.mxu0 %v1717_v21  ;;  %331 = vmatprep.subr.bf16.mxu1 %v1809_v0  ;;  %v1784_v18 = vld [vmem:[%s2276_s0 + $0x298] sm:$0xff]   ;;  %v1787_v21 = vld [vmem:[%s2276_s0 + $0x2a0] sm:$0xff]  }
  0x1d   :  { %1596 = vmatprep.subr.bf16.mxu0 %v1718_v23  ;;  %v1785_v20 = vld [vmem:[%s2276_s0 + $0x258] sm:$0xff]   ;;  %v1781_v23 = vld [vmem:[%s2276_s0 + $0x248] sm:$0xff]  }
  0x1f   :  { %332 = vmatpush1.bf16.msra.mxu1 %v1719_v24  ;;  %v1788_v24 = vld [vmem:[%s2276_s0 + $0x260] sm:$0xff]  }
  0x20   :  { %1597 = vmatpush3.bf16.msra.mxu0 %v1720_v26  ;;  %333 = vmatprep.subr.bf16.mxu1 %v1809_v0  ;;  %v1790_v26 = vld [vmem:[%s2276_s0 + $0x2a8] sm:$0xff]  }
  0x21   :  { %1610 = vmatprep.subr.bf16.mxu0 %v1728_v27  ;;  %v1783_v27 = vld [vmem:[%s2276_s0 + $0x250] sm:$0xff]  }
  0x23   :  { %301 = vmatmul.mubr.bf16.vlgmr.msra.gmra.mrb[0].mxu0 %v1931_v28  ;;  %334 = vmatpush1.bf16.msra.mxu1 %v1724_v29  ;;  %v1791_v29 = vld [vmem:[%s2276_s0 + $0x268] sm:$0xff]  }
  0x24   :  { %616 = vmatprep.subr.bf16.mxu1 %v1809_v0  ;;  %1611 = vmatpush3.bf16.msra.mxu0 %v1730_v30  ;;  %v1275_v30 = vld [vmem:[%s2278_s2] sm:$0xff] }
  0x25   :  { %1612 = vmatprep.subr.bf16.mxu0 %v1731_v31  ;;  %308 = vmatprep.mubr.bf16.mxu0 %v1986_v43  ;;  %v1277_v31 = vld [vmem:[%s2278_s2 + $0x10] sm:$0xff] }
  0x26   :  { %350 = vmatmul.mubr.bf16.vlgmr.msra.gmra.mrb[0].mxu1 %v1946_v32  ;;  %1281 = vperm.xlu0 %1695, %v1275_v30  }
  0x27   :  { %617 = vmatpush1.bf16.msra.mxu1 %v1729_v33  ;;  %1350 = vmatprep.mubr.msk.bf16.mxu1 %vm261_vm0, %v1996_v45  ;;  %v1793_v33 = vld [vmem:[%s2276_s0 + $0x2b0] sm:$0xff]  }
  0x28   :  { %618 = vmatprep.subr.bf16.mxu1 %v1809_v0  ;;  %1613 = vmatpush3.bf16.msra.mxu0 %v1733_v34  ;;  %v1786_v34 = vld [vmem:[%s2276_s0 + $0x2d8] sm:$0xff]  }
  0x29   :  { %1614 = vmatprep.subr.bf16.mxu0 %v1734_v35  ;;  %1291 = vperm.xlu1 %1696, %v1277_v31   ;;  %v1794_v35 = vld [vmem:[%s2276_s0 + $0x270] sm:$0xff]  }
  0x2b   :  { %619 = vmatpush1.bf16.msra.mxu1 %v1732_v36  ;;  %309 = vmatmul.mubr.bf16.gmra.mrb[4].mxu0 %v1991_v44  ;;  %v1276_v36 = vld [vmem:[%s2278_s2 + $0x8] sm:$0xff] }
  0x2c   :  { %620 = vmatprep.subr.bf16.mxu1 %v1809_v0  ;;  %1615 = vmatpush3.bf16.msra.mxu0 %v1736_v37  ;;  %v1796_v37 = vld [vmem:[%s2276_s0 + $0x2b8] sm:$0xff]  }
  0x2d   :  { %1616 = vmatprep.subr.bf16.mxu0 %v1737_v38  ;;  %599 = vmatprep.mubr.bf16.mxu0 %v1905_v22  ;;  %v1278_v38 = vld [vmem:[%s2278_s2 + $0x18] sm:$0xff] }
  0x2e   :  { %358 = vmatmul.mubr.bf16.gmra.mrb[4].mxu1 %v2012_v48  ;;  %1286 = vperm.xlu0 %1695, %v1276_v36  }
  0x2f   :  { %621 = vmatpush1.bf16.msra.mxu1 %v1735_v39  ;;  %1426 = vmatprep.mubr.msk.bf16.mxu1 %vm261_vm0, %v1917_v25  ;;  %v1797_v39 = vld [vmem:[%s2276_s0 + $0x278] sm:$0xff]  }
  0x30   :  { %622 = vmatprep.subr.bf16.mxu1 %v1809_v0  ;;  %1617 = vmatpush3.bf16.msra.mxu0 %v1739_v40  ;;  %v1799_v40 = vld [vmem:[%s2276_s0 + $0x2c0] sm:$0xff]  }
  0x31   :  { %1618 = vmatprep.subr.bf16.mxu0 %v1740_v42  ;;  %1296 = vperm.xlu1 %1696, %v1278_v38   ;;  %v1800_v42 = vld [vmem:[%s2276_s0 + $0x280] sm:$0xff]  }
  0x33   :  { %623 = vmatpush1.bf16.msra.mxu1 %v1738_v41  ;;  %v1792_v41 = vld [vmem:[%s2276_s0 + $0x2e8] sm:$0xff]  }
  0x34   :  { %624 = vmatprep.subr.bf16.mxu1 %v1809_v0  ;;  %1619 = vmatpush3.bf16.msra.mxu0 %v1742_v46  ;;  %v1802_v46 = vld [vmem:[%s2276_s0 + $0x2c8] sm:$0xff]  }
  0x35   :  { %1620 = vmatprep.subr.bf16.mxu0 %v1743_v47  ;;  %v1795_v47 = vld [vmem:[%s2276_s0 + $0x2f0] sm:$0xff]  }
  0x37   :  { %625 = vmatpush1.bf16.msra.mxu1 %v1741_v49  ;;  %v1803_v49 = vld [vmem:[%s2276_s0 + $0x288] sm:$0xff]  }
  0x38   :  { %626 = vmatprep.subr.bf16.mxu1 %v1809_v0  ;;  %1621 = vmatpush3.bf16.msra.mxu0 %v1745_v50  ;;  %v1805_v50 = vld [vmem:[%s2276_s0 + $0x2d0] sm:$0xff]  }
  0x39   :  { %1622 = vmatprep.subr.bf16.mxu0 %v1751_v51  ;;  %v1798_v51 = vld [vmem:[%s2276_s0 + $0x2f8] sm:$0xff]  }
  0x3b   :  { %627 = vmatpush1.bf16.msra.mxu1 %v1744_v52  ;;  %v1801_v52 = vld [vmem:[%s2276_s0 + $0x300] sm:$0xff]  }
  0x3c   :  { %628 = vmatprep.subr.bf16.mxu1 %v1809_v0  ;;  %1623 = vmatpush3.bf16.msra.mxu0 %v1754_v53  ;;  %v1804_v53 = vld [vmem:[%s2276_s0 + $0x308] sm:$0xff]  }
  0x3d   :  { %1624 = vmatprep.subr.bf16.mxu0 %v1755_v54  ;;  %v1807_v54 = vld [vmem:[%s2276_s0 + $0x310] sm:$0xff]  }
  0x3f   :  { %629 = vmatpush1.bf16.msra.mxu1 %v1752_v55  ;;  %v1808_v55 = vld [vmem:[%s2276_s0 + $0x318] sm:$0xff]  }
  0x40   :  { %630 = vmatprep.subr.bf16.mxu1 %v1809_v0  ;;  %1625 = vmatpush3.bf16.msra.mxu0 %v1757_v56 }
  0x41   :  { %1638 = vmatprep.subr.bf16.mxu0 %v1759_v57 }
  0x43   :  { %631 = vmatpush1.bf16.msra.mxu1 %v1756_v58  ;;  %600 = vmatmul.mubr.bf16.vlgmr.msra.gmra.mrb[8].mxu0 %v1931_v28 }
  0x44   :  { %632 = vmatprep.subr.bf16.mxu1 %v1809_v0  ;;  %1639 = vmatpush3.bf16.msra.mxu0 %v1761_v59 }
  0x45   :  { %607 = vmatprep.mubr.bf16.mxu0 %v1986_v43  ;;  %1640 = vmatprep.subr.bf16.mxu0 %v1762_v60 }
  0x47   :  { %633 = vmatpush1.bf16.msra.mxu1 %v1758_v61 }
  0x48   :  { %919 = vmatprep.subr.bf16.mxu1 %v1809_v0  ;;  %1641 = vmatpush3.bf16.msra.mxu0 %v1764_v62 }
  0x49   :  { %1642 = vmatprep.subr.bf16.mxu0 %v1765_v63 }
  0x4a   :  { %649 = vmatmul.mubr.bf16.vlgmr.msra.gmra.mrb[8].mxu1 %v1946_v32 }
  0x4b   :  { %920 = vmatpush1.bf16.msra.mxu1 %v1760_v1  ;;  %608 = vmatmul.mubr.bf16.gmra.mrb[12].mxu0 %v1991_v44 }
  0x4c   :  { %921 = vmatprep.subr.bf16.mxu1 %v1809_v0  ;;  %1427 = vmatprep.mubr.msk.bf16.mxu1 %vm261_vm0, %v1996_v45 }
  0x4d   :  { %1643 = vmatpush3.bf16.msra.mxu0 %v1767_v2  ;;  %902 = vmatprep.mubr.bf16.mxu0 %v1905_v22 }
  0x4e   :  { %1644 = vmatprep.subr.bf16.mxu0 %v1768_v3 }
  0x4f   :  { %922 = vmatpush1.bf16.msra.mxu1 %v1763_v4 }
  0x50   :  { %923 = vmatprep.subr.bf16.mxu1 %v1809_v0 }
  0x51   :  { %1645 = vmatpush3.bf16.msra.mxu0 %v1770_v5 }
  0x52   :  { %657 = vmatmul.mubr.bf16.gmra.mrb[12].mxu1 %v2012_v48  ;;  %1646 = vmatprep.subr.bf16.mxu0 %v1771_v6 }
  0x53   :  { %924 = vmatpush1.bf16.msra.mxu1 %v1766_v7  ;;  %1503 = vmatprep.mubr.msk.bf16.mxu1 %vm261_vm0, %v1917_v25 }
  0x54   :  { %925 = vmatprep.subr.bf16.mxu1 %v1809_v0 }
  0x55   :  { %1647 = vmatpush3.bf16.msra.mxu0 %v1773_v8 }
  0x56   :  { %1648 = vmatprep.subr.bf16.mxu0 %v1774_v9 }
  0x57   :  { %926 = vmatpush1.bf16.msra.mxu1 %v1769_v10 }
  0x58   :  { %927 = vmatprep.subr.bf16.mxu1 %v1809_v0 }
  0x59   :  { %1649 = vmatpush3.bf16.msra.mxu0 %v1776_v11 }
  0x5a   :  { %1650 = vmatprep.subr.bf16.mxu0 %v1777_v12 }
  0x5b   :  { %928 = vmatpush1.bf16.msra.mxu1 %v1772_v13 }
  0x5c   :  { %929 = vmatprep.subr.bf16.mxu1 %v1809_v0 }
  0x5d   :  { %1651 = vmatpush3.bf16.msra.mxu0 %v1779_v14 }
  0x5e   :  { %1652 = vmatprep.subr.bf16.mxu0 %v1780_v15 }
  0x5f   :  { %930 = vmatpush1.bf16.msra.mxu1 %v1775_v16 }
  0x60   :  { %931 = vmatprep.subr.bf16.mxu1 %v1809_v0 }
  0x61   :  { %1653 = vmatpush3.bf16.msra.mxu0 %v1782_v17 }
  0x62   :  { %1666 = vmatprep.subr.bf16.mxu0 %v1784_v18 }
  0x63   :  { %932 = vmatpush1.bf16.msra.mxu1 %v1778_v19 }
  0x64   :  { %933 = vmatprep.subr.bf16.mxu1 %v1809_v0  ;;  %903 = vmatmul.mubr.bf16.vlgmr.msra.gmra.mrb[16].mxu0 %v1931_v28 }
  0x65   :  { %1667 = vmatpush3.bf16.msra.mxu0 %v1785_v20  ;;  %910 = vmatprep.mubr.bf16.mxu0 %v1986_v43 }
  0x66   :  { %1668 = vmatprep.subr.bf16.mxu0 %v1787_v21 }
  0x67   :  { %934 = vmatpush1.bf16.msra.mxu1 %v1781_v23 }
  0x68   :  { %935 = vmatprep.subr.bf16.mxu1 %v1809_v0 }
  0x69   :  { %1669 = vmatpush3.bf16.msra.mxu0 %v1788_v24 }
  0x6a   :  { %1670 = vmatprep.subr.bf16.mxu0 %v1790_v26 }
  0x6b   :  { %936 = vmatpush1.bf16.msra.mxu1 %v1783_v27 }
  0x6c   :  { %1222 = vmatprep.subr.bf16.mxu1 %v1809_v0  ;;  %911 = vmatmul.mubr.bf16.gmra.mrb[20].mxu0 %v1991_v44 }
  0x6d   :  { %1671 = vmatpush3.bf16.msra.mxu0 %v1791_v29  ;;  %1205 = vmatprep.mubr.bf16.mxu0 %v1905_v22  ;;  %v1789_v22 = vld [vmem:[%s2276_s0 + $0x2e0] sm:$0xff]  }
  0x6e   :  { %952 = vmatmul.mubr.bf16.vlgmr.msra.gmra.mrb[16].mxu1 %v1946_v32  ;;  %1672 = vmatprep.subr.bf16.mxu0 %v1793_v33 }
  0x6f   :  { %1223 = vmatpush1.bf16.msra.mxu1 %v1786_v34  ;;  %1504 = vmatprep.mubr.msk.bf16.mxu1 %vm261_vm0, %v1996_v45 }
  0x70   :  { %1224 = vmatprep.subr.bf16.mxu1 %v1809_v0 }
  0x71   :  { %1673 = vmatpush3.bf16.msra.mxu0 %v1794_v35 }
  0x72   :  { %1674 = vmatprep.subr.bf16.mxu0 %v1796_v37 }
  0x73   :  { %1225 = vmatpush1.bf16.msra.mxu1 %v1789_v22 }
  0x74   :  { %1226 = vmatprep.subr.bf16.mxu1 %v1809_v0 }
  0x75   :  { %1675 = vmatpush3.bf16.msra.mxu0 %v1797_v39 }
  0x76   :  { %960 = vmatmul.mubr.bf16.gmra.mrb[20].mxu1 %v2012_v48  ;;  %1676 = vmatprep.subr.bf16.mxu0 %v1799_v40 }
  0x77   :  { %1227 = vmatpush1.bf16.msra.mxu1 %v1792_v41  ;;  %1580 = vmatprep.mubr.msk.bf16.mxu1 %vm261_vm0, %v1917_v25  ;;  %v1806_v25 = vld [vmem:[%s2276_s0 + $0x290] sm:$0xff]  }
  0x78   :  { %1228 = vmatprep.subr.bf16.mxu1 %v1809_v0 }
  0x79   :  { %1677 = vmatpush3.bf16.msra.mxu0 %v1800_v42 }
  0x7a   :  { %1678 = vmatprep.subr.bf16.mxu0 %v1802_v46 }
  0x7b   :  { %1229 = vmatpush1.bf16.msra.mxu1 %v1795_v47 }
  0x7c   :  { %1230 = vmatprep.subr.bf16.mxu1 %v1809_v0 }
  0x7d   :  { %1679 = vmatpush3.bf16.msra.mxu0 %v1803_v49 }
  0x7e   :  { %1680 = vmatprep.subr.bf16.mxu0 %v1805_v50 }
  0x7f   :  { %1231 = vmatpush1.bf16.msra.mxu1 %v1798_v51 }
  0x80   :  { %1232 = vmatprep.subr.bf16.mxu1 %v1809_v0 }
  0x81   :  { %1681 = vmatpush3.bf16.msra.mxu0 %v1806_v25 }
  0x83   :  { %1233 = vmatpush1.bf16.msra.mxu1 %v1801_v52 }
  0x84   :  { %1234 = vmatprep.subr.bf16.mxu1 %v1809_v0  ;;  %1206 = vmatmul.mubr.bf16.vlgmr.msra.gmra.mrb[24].mxu0 %v1931_v28 }
  0x85   :  { %1213 = vmatprep.mubr.bf16.mxu0 %v1986_v43 }
  0x87   :  { %1235 = vmatpush1.bf16.msra.mxu1 %v1804_v53 }
  0x88   :  { %1236 = vmatprep.subr.bf16.mxu1 %v1809_v0 }
  0x8b   :  { %1237 = vmatpush1.bf16.msra.mxu1 %v1807_v54 }
  0x8c   :  { %1238 = vmatprep.subr.bf16.mxu1 %v1809_v0  ;;  %1214 = vmatmul.mubr.bf16.gmra.mrb[28].mxu0 %v1991_v44 }
  0x8f   :  { %1239 = vmatpush1.bf16.msra.mxu1 %v1808_v55 }
  0x92   :  { %1255 = vmatmul.mubr.bf16.vlgmr.msra.gmra.mrb[24].mxu1 %v1946_v32 }
  0x93   :  { %1581 = vmatprep.mubr.msk.bf16.mxu1 %vm261_vm0, %v1996_v45 }
  0x9a   :  { %1263 = vmatmul.mubr.bf16.gmra.mrb[28].mxu1 %v2012_v48 }
  0xf6   :  { %v1598_v28 = vpop.f32.mrb[0].mxu0 }
  0xf7   :  { %v1599_v43 = vpop.f32.mrb[1].mxu0 }
  0xf8   :  { %v1600_v56 = vadd.f32 %v1599_v43, %v1598_v28  ;;  %v1601_v57 = vpop.f32.mrb[2].mxu0 }
  0xf9   :  { %v1602_v58 = vpop.f32.mrb[3].mxu0  ;;  %v351_v59 = vpop.f32.mrb[0].mxu1 }
  0xfa   :  { %v1603_v60 = vadd.f32 %v1602_v58, %v1601_v57  ;;  %v352_v61 = vadd.f32 %v1600_v56, %v351_v59  ;;  %v353_v62 = vpop.f32.mrb[1].mxu1 }
  0xfb   :  { %v354_v0 = vpop.f32.mrb[2].mxu1 }
  0xfc   :  { %v355_v63 = vadd.f32 %v1603_v60, %v354_v0  ;;  %v356_v44 = vpop.f32.mrb[3].mxu1 }
  0xfe   :  { %v1604_v1 = vpop.f32.mrb[4].mxu0 }
  0xff   :  { %v1605_v2 = vpop.f32.mrb[5].mxu0 }
 0x100   :  { %v1606_v32 = vadd.f32 %v1605_v2, %v1604_v1  ;;  %v1607_v3 = vpop.f32.mrb[6].mxu0 }
 0x101   :  { %v359_v4 = vpop.f32.mrb[4].mxu1  ;;  %v1608_v45 = vpop.f32.mrb[7].mxu0 }
 0x102   :  { %v360_v5 = vadd.f32 %v1606_v32, %v359_v4  ;;  %v1609_v48 = vadd.f32 %v1608_v45, %v1607_v3  ;;  %v361_v6 = vpop.f32.mrb[5].mxu1 }
 0x103   :  { %v362_v7 = vpop.f32.mrb[6].mxu1 }
 0x104   :  { %v363_v8 = vadd.f32 %v1609_v48, %v362_v7  ;;  %v364_v9 = vpop.f32.mrb[7].mxu1 }
 0x116   :  { %v1626_v10 = vpop.f32.mrb[8].mxu0 }
 0x117   :  { %v1627_v11 = vpop.f32.mrb[9].mxu0 }
 0x118   :  { %v1628_v12 = vadd.f32 %v1627_v11, %v1626_v10  ;;  %v1629_v13 = vpop.f32.mrb[10].mxu0 }
 0x119   :  { %v1630_v14 = vpop.f32.mrb[11].mxu0 }
 0x11a   :  { %v1631_v15 = vadd.f32 %v1630_v14, %v1629_v13  ;;  %v1282_v13 = vpop.permute.xlu0 %1281 }
 0x11d   :  { %v650_v16 = vpop.f32.mrb[8].mxu1 }
 0x11e   :  { %v651_v17 = vadd.f32 %v1628_v12, %v650_v16  ;;  %v652_v18 = vpop.f32.mrb[9].mxu1  ;;  %v1632_v19 = vpop.f32.mrb[12].mxu0 }
 0x11f   :  { %v653_v20 = vpop.f32.mrb[10].mxu1  ;;  %v1633_v21 = vpop.f32.mrb[13].mxu0 }
 0x120   :  { %v665_v23 = vmax.f32 %v352_v61, %v651_v17  ;;  %v654_v24 = vadd.f32 %v1631_v15, %v653_v20  ;;  %v655_v26 = vpop.f32.mrb[11].mxu1  ;;  %v1634_v27 = vadd.f32 %v1633_v21, %v1632_v19  ;;  %v1635_v29 = vpop.f32.mrb[14].mxu0 }
 0x121   :  { %v1636_v30 = vpop.f32.mrb[15].mxu0 }
 0x122   :  { %v666_v31 = vmax.f32 %v355_v63, %v654_v24  ;;  %v1637_v33 = vadd.f32 %v1636_v30, %v1635_v29  ;;  %v1292_v30 = vpop.permute.xlu1 %1291 }
 0x125   :  { %v658_v34 = vpop.f32.mrb[12].mxu1 }
 0x126   :  { %v659_v35 = vadd.f32 %v1634_v27, %v658_v34  ;;  %v660_v36 = vpop.f32.mrb[13].mxu1 }
 0x127   :  { %v661_v37 = vpop.f32.mrb[14].mxu1 }
 0x128   :  { %v667_v38 = vmax.f32 %v360_v5, %v659_v35  ;;  %v662_v22 = vadd.f32 %v1637_v33, %v661_v37  ;;  %v663_v39 = vpop.f32.mrb[15].mxu1 }
 0x12a   :  { %v668_v40 = vmax.f32 %v363_v8, %v662_v22 }
 0x137   :  { %v1654_v41 = vpop.f32.mrb[16].mxu0 }
 0x138   :  { %v1655_v42 = vpop.f32.mrb[17].mxu0 }
 0x139   :  { %v1656_v46 = vadd.f32 %v1655_v42, %v1654_v41  ;;  %v1657_v47 = vpop.f32.mrb[18].mxu0  ;;  %v1297_v41 = vpop.permute.xlu1 %1296 }
 0x13a   :  { %v1658_v49 = vpop.f32.mrb[19].mxu0 }
 0x13b   :  { %v1659_v50 = vadd.f32 %v1658_v49, %v1657_v47 }
 0x13f   :  { %v1660_v51 = vpop.f32.mrb[20].mxu0 }
 0x140   :  { %v1661_v25 = vpop.f32.mrb[21].mxu0 }
 0x141   :  { %v953_v52 = vpop.f32.mrb[16].mxu1  ;;  %v1662_v53 = vadd.f32 %v1661_v25, %v1660_v51  ;;  %v1663_v54 = vpop.f32.mrb[22].mxu0 }
 0x142   :  { %v954_v55 = vadd.f32 %v1656_v46, %v953_v52  ;;  %v955_v28 = vpop.f32.mrb[17].mxu1  ;;  %v1664_v43 = vpop.f32.mrb[23].mxu0 }
 0x143   :  { %v956_v56 = vpop.f32.mrb[18].mxu1  ;;  %v1665_v57 = vadd.f32 %v1664_v43, %v1663_v54 }
 0x144   :  { %v968_v58 = vmax.f32 %v665_v23, %v954_v55  ;;  %v957_v59 = vadd.f32 %v1659_v50, %v956_v56  ;;  %v958_v60 = vpop.f32.mrb[19].mxu1  ;;  %v1287_v23 = vpop.permute.xlu0 %1286 }
 0x146   :  { %v969_v61 = vmax.f32 %v666_v31, %v957_v59 }
 0x149   :  { %v961_v62 = vpop.f32.mrb[20].mxu1 }
 0x14a   :  { %v962_v0 = vadd.f32 %v1662_v53, %v961_v62  ;;  %v963_v63 = vpop.f32.mrb[21].mxu1 }
 0x14b   :  { %v964_v44 = vpop.f32.mrb[22].mxu1 }
 0x14c   :  { %v970_v1 = vmax.f32 %v667_v38, %v962_v0  ;;  %v965_v2 = vadd.f32 %v1665_v57, %v964_v44  ;;  %v966_v32 = vpop.f32.mrb[23].mxu1 }
 0x14e   :  { %v971_v3 = vmax.f32 %v668_v40, %v965_v2 }
 0x157   :  { %v1682_v4 = vpop.f32.mrb[24].mxu0 }
 0x158   :  { %v1683_v45 = vpop.f32.mrb[25].mxu0 }
 0x159   :  { %v1684_v5 = vadd.f32 %v1683_v45, %v1682_v4  ;;  %v1685_v48 = vpop.f32.mrb[26].mxu0 }
 0x15a   :  { %v1686_v6 = vpop.f32.mrb[27].mxu0 }
 0x15b   :  { %v1687_v7 = vadd.f32 %v1686_v6, %v1685_v48 }
 0x15f   :  { %v1688_v8 = vpop.f32.mrb[28].mxu0 }
 0x160   :  { %v1689_v9 = vpop.f32.mrb[29].mxu0 }
 0x161   :  { %v1690_v10 = vadd.f32 %v1689_v9, %v1688_v8  ;;  %v1691_v11 = vpop.f32.mrb[30].mxu0 }
 0x162   :  { %v1692_v12 = vpop.f32.mrb[31].mxu0 }
 0x163   :  { %v1693_v14 = vadd.f32 %v1692_v12, %v1691_v11 }
 0x165   :  { %v1256_v15 = vpop.f32.mrb[24].mxu1 }
 0x166   :  { %v1257_v16 = vadd.f32 %v1684_v5, %v1256_v15  ;;  %v1258_v17 = vpop.f32.mrb[25].mxu1 }
 0x167   :  { %v1259_v18 = vpop.f32.mrb[26].mxu1 }
 0x168   :  { %v1271_v19 = vmax.f32 %v968_v58, %v1257_v16  ;;  %v1260_v20 = vadd.f32 %v1687_v7, %v1259_v18  ;;  %v1261_v21 = vpop.f32.mrb[27].mxu1 }
 0x16a   :  { %v1299_v24 = vadd.f32 %v1282_v13, %v1271_v19  ;;  %v1272_v26 = vmax.f32 %v969_v61, %v1260_v20 }
 0x16c   :  { %v1303_v27 = vmax.f32 %v1299_v24, 0.0  ;;  %v1300_v29 = vadd.f32 %v1287_v23, %v1272_v26 }
 0x16d   :  { %v1264_v31 = vpop.f32.mrb[28].mxu1 }
 0x16e   :  { %1308 = vst.msk [vmem:[%s2279_s3] sm:$0xff] %vm1307_vm1, %v1303_v27  ;;  %v1304_v33 = vmax.f32 %v1300_v29, 0.0  ;;  %v1265_v34 = vadd.f32 %v1690_v10, %v1264_v31  ;;  %v1266_v35 = vpop.f32.mrb[29].mxu1 }
 0x16f   :  { %v1267_v36 = vpop.f32.mrb[30].mxu1 }
 0x170   :  { %1309 = vst.msk [vmem:[%s2279_s3 + $0x8] sm:$0xff] %vm1307_vm1, %v1304_v33  ;;  %v1273_v37 = vmax.f32 %v970_v1, %v1265_v34  ;;  %v1268_v38 = vadd.f32 %v1693_v14, %v1267_v36  ;;  %v1269_v22 = vpop.f32.mrb[31].mxu1 }
 0x172   :  { %v1301_v39 = vadd.f32 %v1292_v30, %v1273_v37  ;;  %v1274_v40 = vmax.f32 %v971_v3, %v1268_v38 }
 0x174   :  { %v1305_v42 = vmax.f32 %v1301_v39, 0.0  ;;  %v1302_v46 = vadd.f32 %v1297_v41, %v1274_v40 }
 0x176   :  { %1310 = vst.msk [vmem:[%s2279_s3 + $0x10] sm:$0xff] %vm1307_vm1, %v1305_v42  ;;  %v1306_v47 = vmax.f32 %v1302_v46, 0.0 }
 0x178   :  { %1311 = vst.msk [vmem:[%s2279_s3 + $0x18] sm:$0xff] %vm1307_vm1, %v1306_v47 }

// kernel: cnn_forward.5
= control target key start
LH: loop header
LB: loop body
LE: loop exit
PB: predicated region body
PF: predicated region fallthrough
CT: control target
= control target key end

     0   :  { %v1263_v43 = vmov 1983009808   ;;  %v230_v45 = vlaneseq  ;;  %s1931_s0 = inlined_call_operand.vmem [shape: f32[2,1568], index: 0, kind: input, shape index: {}]   ;;  %s1932_s1 = inlined_call_operand.vmem [shape: f32[1568,128], index: 1, kind: input, shape index: {}]   ;;  %s1933_s2 = inlined_call_operand.vmem [shape: f32[1,128], index: 2, kind: input, shape index: {}]   ;;  %s1934_s3 = inlined_call_operand.hbm [shape: f32[2,128], index: 3, kind: output, shape index: {}]  }
   0x1   :  { %v35_v0 = vld [vmem:[%s1932_s1 + $0x80] sm:$0xff]  ;;  %v36_v1 = vld [vmem:[%s1932_s1 + $0x88] sm:$0xff]  ;;  %v37_v11 = vld [vmem:[%s1932_s1 + $0x90] sm:$0xff]  ;;  %v228_v44 = vunpack.c.l.s4 %v1263_v43 }
   0x2   :  { %v19_v2 = vld [vmem:[%s1932_s1] sm:$0xff]  ;;  %v1033_v3 = vpack.c.bf16 %v36_v1, %v35_v0  ;;  %v20_v4 = vld [vmem:[%s1932_s1 + $0x8] sm:$0xff]  ;;  %v38_v13 = vld [vmem:[%s1932_s1 + $0x98] sm:$0xff]  ;;  %v231_v60 = vshrl.u32 %v230_v45, 7 }
   0x3   :  { %v67_v5 = vld [vmem:[%s1932_s1 + $0x180] sm:$0xff]  ;;  %v68_v6 = vld [vmem:[%s1932_s1 + $0x188] sm:$0xff]  ;;  %v1035_v7 = vpack.c.bf16 %v20_v4, %v19_v2  ;;  %v21_v14 = vld [vmem:[%s1932_s1 + $0x10] sm:$0xff]  ;;  %v1037_v16 = vpack.c.bf16 %v38_v13, %v37_v11  ;;  %v229_v59 = vunpack.c.0.s8 %v228_v44 }
   0x4   :  { %v1065_v8 = vpack.c.bf16 %v68_v6, %v67_v5  ;;  %v51_v9 = vld [vmem:[%s1932_s1 + $0x100] sm:$0xff]  ;;  %v52_v10 = vld [vmem:[%s1932_s1 + $0x108] sm:$0xff]  ;;  %1034 = vmatprep.subr.bf16.mxu0 %v1033_v3  ;;  %v22_v15 = vld [vmem:[%s1932_s1 + $0x18] sm:$0xff] }
   0x5   :  { %v1067_v12 = vpack.c.bf16 %v52_v10, %v51_v9  ;;  %1036 = vmatpush3.bf16.msra.mxu0 %v1035_v7  ;;  %v1039_v17 = vpack.c.bf16 %v22_v15, %v21_v14  ;;  %v69_v18 = vld [vmem:[%s1932_s1 + $0x190] sm:$0xff]  ;;  %v70_v19 = vld [vmem:[%s1932_s1 + $0x198] sm:$0xff]  ;;  %v39_v23 = vld [vmem:[%s1932_s1 + $0xa0] sm:$0xff]  ;;  %v1432_v10 = vsub.s32 %v229_v59, %v231_v60 }
   0x6   :  { %1066 = vmatprep.subr.bf16.mxu1 %v1065_v8  ;;  %v53_v20 = vld [vmem:[%s1932_s1 + $0x110] sm:$0xff]  ;;  %v1069_v21 = vpack.c.bf16 %v70_v19, %v69_v18  ;;  %v54_v22 = vld [vmem:[%s1932_s1 + $0x118] sm:$0xff]  ;;  %v40_v24 = vld [vmem:[%s1932_s1 + $0xa8] sm:$0xff]  ;;  %1038 = vmatprep.subr.bf16.mxu0 %v1037_v16 }
   0x7   :  { %1068 = vmatpush3.bf16.msra.mxu1 %v1067_v12  ;;  %v1071_v25 = vpack.c.bf16 %v54_v22, %v53_v20  ;;  %v1041_v26 = vpack.c.bf16 %v40_v24, %v39_v23  ;;  %v23_v27 = vld [vmem:[%s1932_s1 + $0x20] sm:$0xff]  ;;  %v24_v28 = vld [vmem:[%s1932_s1 + $0x28] sm:$0xff]  ;;  %v41_v35 = vld [vmem:[%s1932_s1 + $0xb0] sm:$0xff] }
   0x8   :  { %v71_v29 = vld [vmem:[%s1932_s1 + $0x1a0] sm:$0xff]  ;;  %1070 = vmatprep.subr.bf16.mxu1 %v1069_v21  ;;  %v72_v30 = vld [vmem:[%s1932_s1 + $0x1a8] sm:$0xff]  ;;  %v1043_v33 = vpack.c.bf16 %v24_v28, %v23_v27  ;;  %v42_v36 = vld [vmem:[%s1932_s1 + $0xb8] sm:$0xff] }
   0x9   :  { %v55_v31 = vld [vmem:[%s1932_s1 + $0x120] sm:$0xff]  ;;  %v56_v32 = vld [vmem:[%s1932_s1 + $0x128] sm:$0xff]  ;;  %1040 = vmatpush3.bf16.msra.mxu0 %v1039_v17  ;;  %v1073_v34 = vpack.c.bf16 %v72_v30, %v71_v29  ;;  %v25_v37 = vld [vmem:[%s1932_s1 + $0x30] sm:$0xff]  ;;  %v1045_v39 = vpack.c.bf16 %v42_v36, %v41_v35 }
   0xa   :  { %1042 = vmatprep.subr.bf16.mxu0 %v1041_v26  ;;  %v1075_v38 = vpack.c.bf16 %v56_v32, %v55_v31  ;;  %v26_v40 = vld [vmem:[%s1932_s1 + $0x38] sm:$0xff]  ;;  %v73_v41 = vld [vmem:[%s1932_s1 + $0x1b0] sm:$0xff]  ;;  %v43_v49 = vld [vmem:[%s1932_s1 + $0xc0] sm:$0xff] }
   0xb   :  { %1072 = vmatpush3.bf16.msra.mxu1 %v1071_v25  ;;  %v74_v42 = vld [vmem:[%s1932_s1 + $0x1b8] sm:$0xff]  ;;  %v57_v47 = vld [vmem:[%s1932_s1 + $0x130] sm:$0xff]  ;;  %v44_v50 = vld [vmem:[%s1932_s1 + $0xc8] sm:$0xff]  ;;  %v1047_v51 = vpack.c.bf16 %v26_v40, %v25_v37 }
   0xc   :  { %1074 = vmatprep.subr.bf16.mxu1 %v1073_v34  ;;  %v1077_v46 = vpack.c.bf16 %v74_v42, %v73_v41  ;;  %v58_v48 = vld [vmem:[%s1932_s1 + $0x138] sm:$0xff]  ;;  %v75_v52 = vld [vmem:[%s1932_s1 + $0x1c0] sm:$0xff]  ;;  %v76_v53 = vld [vmem:[%s1932_s1 + $0x1c8] sm:$0xff]  ;;  %v1049_v55 = vpack.c.bf16 %v44_v50, %v43_v49 }
   0xd   :  { %1044 = vmatpush3.bf16.msra.mxu0 %v1043_v33  ;;  %v1079_v54 = vpack.c.bf16 %v58_v48, %v57_v47  ;;  %v27_v56 = vld [vmem:[%s1932_s1 + $0x40] sm:$0xff]  ;;  %v28_v57 = vld [vmem:[%s1932_s1 + $0x48] sm:$0xff]  ;;  %v1081_v61 = vpack.c.bf16 %v76_v53, %v75_v52  ;;  %v45_v63 = vld [vmem:[%s1932_s1 + $0xd0] sm:$0xff] }
   0xe   :  { %1046 = vmatprep.subr.bf16.mxu0 %v1045_v39  ;;  %v59_v58 = vld [vmem:[%s1932_s1 + $0x140] sm:$0xff]  ;;  %v60_v62 = vld [vmem:[%s1932_s1 + $0x148] sm:$0xff]  ;;  %v46_v0 = vld [vmem:[%s1932_s1 + $0xd8] sm:$0xff]  ;;  %v1051_v3 = vpack.c.bf16 %v28_v57, %v27_v56 }
   0xf   :  { %1076 = vmatpush3.bf16.msra.mxu1 %v1075_v38  ;;  %v77_v1 = vld [vmem:[%s1932_s1 + $0x1d0] sm:$0xff]  ;;  %v78_v2 = vld [vmem:[%s1932_s1 + $0x1d8] sm:$0xff]  ;;  %v1083_v5 = vpack.c.bf16 %v60_v62, %v59_v58  ;;  %v1053_v6 = vpack.c.bf16 %v46_v0, %v45_v63  ;;  %v47_v12 = vld [vmem:[%s1932_s1 + $0xe0] sm:$0xff] }
  0x10   :  { %1078 = vmatprep.subr.bf16.mxu1 %v1077_v46  ;;  %v29_v4 = vld [vmem:[%s1932_s1 + $0x50] sm:$0xff]  ;;  %v30_v7 = vld [vmem:[%s1932_s1 + $0x58] sm:$0xff]  ;;  %v1085_v11 = vpack.c.bf16 %v78_v2, %v77_v1  ;;  %v48_v13 = vld [vmem:[%s1932_s1 + $0xe8] sm:$0xff] }
  0x11   :  { %1048 = vmatpush3.bf16.msra.mxu0 %v1047_v51  ;;  %v61_v8 = vld [vmem:[%s1932_s1 + $0x150] sm:$0xff]  ;;  %v62_v9 = vld [vmem:[%s1932_s1 + $0x158] sm:$0xff]  ;;  %v79_v14 = vld [vmem:[%s1932_s1 + $0x1e0] sm:$0xff]  ;;  %v1055_v16 = vpack.c.bf16 %v30_v7, %v29_v4  ;;  %v1057_v19 = vpack.c.bf16 %v48_v13, %v47_v12 }
  0x12   :  { %1050 = vmatprep.subr.bf16.mxu0 %v1049_v55  ;;  %v80_v15 = vld [vmem:[%s1932_s1 + $0x1e8] sm:$0xff]  ;;  %v1087_v17 = vpack.c.bf16 %v62_v9, %v61_v8  ;;  %v15_v18 = vld [vmem:[%s1931_s0] sm:$0xff]  ;;  %v49_v27 = vld [vmem:[%s1932_s1 + $0xf0] sm:$0xff] }
  0x13   :  { %1080 = vmatpush3.bf16.msra.mxu1 %v1079_v54  ;;  %v31_v20 = vld [vmem:[%s1932_s1 + $0x60] sm:$0xff]  ;;  %v32_v21 = vld [vmem:[%s1932_s1 + $0x68] sm:$0xff]  ;;  %v233_v23 = vrot.slane %v15_v18, %v1432_v10  ;;  %v226_v24 = vcombine.high %v15_v18, %v15_v18  ;;  %v1089_v25 = vpack.c.bf16 %v80_v15, %v79_v14  ;;  %v50_v28 = vld [vmem:[%s1932_s1 + $0xf8] sm:$0xff] }
  0x14   :  { %1082 = vmatprep.subr.bf16.mxu1 %v1081_v61  ;;  %v63_v22 = vld [vmem:[%s1932_s1 + $0x160] sm:$0xff]  ;;  %v64_v26 = vld [vmem:[%s1932_s1 + $0x168] sm:$0xff]  ;;  %v81_v29 = vld [vmem:[%s1932_s1 + $0x1f0] sm:$0xff]  ;;  %v1059_v33 = vpack.c.bf16 %v32_v21, %v31_v20  ;;  %v1061_v35 = vpack.c.bf16 %v50_v28, %v49_v27 }
  0x15   :  { %1052 = vmatpush3.bf16.msra.mxu0 %v1051_v3  ;;  %v82_v30 = vld [vmem:[%s1932_s1 + $0x1f8] sm:$0xff]  ;;  %v241_v31 = vcombine.high %v233_v23, %v233_v23  ;;  %v240_v32 = vrot.slane %v226_v24, %v1432_v10  ;;  %v1091_v34 = vpack.c.bf16 %v64_v26, %v63_v22  ;;  %v33_v36 = vld [vmem:[%s1932_s1 + $0x70] sm:$0xff]  ;;  %v99_v42 = vld [vmem:[%s1932_s1 + $0x280] sm:$0xff] }
  0x16   :  { %1054 = vmatprep.subr.bf16.mxu0 %v1053_v6  ;;  %v34_v37 = vld [vmem:[%s1932_s1 + $0x78] sm:$0xff]  ;;  %v65_v38 = vld [vmem:[%s1932_s1 + $0x170] sm:$0xff]  ;;  %v1093_v40 = vpack.c.bf16 %v82_v30, %v81_v29  ;;  %v100_v43 = vld [vmem:[%s1932_s1 + $0x288] sm:$0xff] }
  0x17   :  { %1084 = vmatpush3.bf16.msra.mxu1 %v1083_v5  ;;  %v242_v39 = vcombine.high %v240_v32, %v240_v32  ;;  %363 = vmatprep.mubr.f32.mxu0 %v241_v31  ;;  %v66_v41 = vld [vmem:[%s1932_s1 + $0x178] sm:$0xff]  ;;  %v131_v44 = vld [vmem:[%s1932_s1 + $0x380] sm:$0xff]  ;;  %v132_v45 = vld [vmem:[%s1932_s1 + $0x388] sm:$0xff]  ;;  %v1063_v46 = vpack.c.bf16 %v34_v37, %v33_v36  ;;  %v1097_v48 = vpack.c.bf16 %v100_v43, %v99_v42 }
  0x18   :  { %1086 = vmatprep.subr.bf16.mxu1 %v1085_v11  ;;  %v1095_v47 = vpack.c.bf16 %v66_v41, %v65_v38  ;;  %v83_v49 = vld [vmem:[%s1932_s1 + $0x200] sm:$0xff]  ;;  %v84_v50 = vld [vmem:[%s1932_s1 + $0x208] sm:$0xff]  ;;  %v1129_v52 = vpack.c.bf16 %v132_v45, %v131_v44  ;;  %v101_v54 = vld [vmem:[%s1932_s1 + $0x290] sm:$0xff] }
  0x19   :  { %1056 = vmatpush3.bf16.msra.mxu0 %v1055_v16  ;;  %433 = vmatprep.mubr.f32.mxu1 %v242_v39  ;;  %v115_v51 = vld [vmem:[%s1932_s1 + $0x300] sm:$0xff]  ;;  %v116_v53 = vld [vmem:[%s1932_s1 + $0x308] sm:$0xff]  ;;  %v102_v55 = vld [vmem:[%s1932_s1 + $0x298] sm:$0xff]  ;;  %v1099_v58 = vpack.c.bf16 %v84_v50, %v83_v49 }
  0x1a   :  { %1058 = vmatprep.subr.bf16.mxu0 %v1057_v19  ;;  %v133_v56 = vld [vmem:[%s1932_s1 + $0x390] sm:$0xff]  ;;  %v134_v57 = vld [vmem:[%s1932_s1 + $0x398] sm:$0xff]  ;;  %v1131_v59 = vpack.c.bf16 %v116_v53, %v115_v51  ;;  %v1101_v60 = vpack.c.bf16 %v102_v55, %v101_v54  ;;  %v103_v2 = vld [vmem:[%s1932_s1 + $0x2a0] sm:$0xff] }
  0x1b   :  { %1088 = vmatpush3.bf16.msra.mxu1 %v1087_v17  ;;  %v85_v61 = vld [vmem:[%s1932_s1 + $0x210] sm:$0xff]  ;;  %v86_v62 = vld [vmem:[%s1932_s1 + $0x218] sm:$0xff]  ;;  %v1133_v0 = vpack.c.bf16 %v134_v57, %v133_v56  ;;  %v104_v3 = vld [vmem:[%s1932_s1 + $0x2a8] sm:$0xff] }
  0x1c   :  { %1090 = vmatprep.subr.bf16.mxu1 %v1089_v25  ;;  %v117_v63 = vld [vmem:[%s1932_s1 + $0x310] sm:$0xff]  ;;  %v118_v1 = vld [vmem:[%s1932_s1 + $0x318] sm:$0xff]  ;;  %v135_v4 = vld [vmem:[%s1932_s1 + $0x3a0] sm:$0xff]  ;;  %v1103_v6 = vpack.c.bf16 %v86_v62, %v85_v61  ;;  %v1105_v8 = vpack.c.bf16 %v104_v3, %v103_v2 }
  0x1d   :  { %1060 = vmatpush3.bf16.msra.mxu0 %v1059_v33  ;;  %v136_v5 = vld [vmem:[%s1932_s1 + $0x3a8] sm:$0xff]  ;;  %v1135_v7 = vpack.c.bf16 %v118_v1, %v117_v63  ;;  %v87_v9 = vld [vmem:[%s1932_s1 + $0x220] sm:$0xff]  ;;  %v105_v15 = vld [vmem:[%s1932_s1 + $0x2b0] sm:$0xff] }
  0x1e   :  { %1062 = vmatprep.subr.bf16.mxu0 %v1061_v35  ;;  %v88_v11 = vld [vmem:[%s1932_s1 + $0x228] sm:$0xff]  ;;  %v119_v12 = vld [vmem:[%s1932_s1 + $0x320] sm:$0xff]  ;;  %v1137_v13 = vpack.c.bf16 %v136_v5, %v135_v4  ;;  %v106_v16 = vld [vmem:[%s1932_s1 + $0x2b8] sm:$0xff] }
  0x1f   :  { %1092 = vmatpush3.bf16.msra.mxu1 %v1091_v34  ;;  %v120_v14 = vld [vmem:[%s1932_s1 + $0x328] sm:$0xff]  ;;  %v137_v17 = vld [vmem:[%s1932_s1 + $0x3b0] sm:$0xff]  ;;  %v138_v18 = vld [vmem:[%s1932_s1 + $0x3b8] sm:$0xff]  ;;  %v1107_v19 = vpack.c.bf16 %v88_v11, %v87_v9  ;;  %v1109_v22 = vpack.c.bf16 %v106_v16, %v105_v15 }
  0x20   :  { %1094 = vmatprep.subr.bf16.mxu1 %v1093_v40  ;;  %v89_v20 = vld [vmem:[%s1932_s1 + $0x230] sm:$0xff]  ;;  %v1139_v21 = vpack.c.bf16 %v120_v14, %v119_v12  ;;  %v122_v25 = vld [vmem:[%s1932_s1 + $0x338] sm:$0xff]  ;;  %v1141_v26 = vpack.c.bf16 %v138_v18, %v137_v17  ;;  %v107_v27 = vld [vmem:[%s1932_s1 + $0x2c0] sm:$0xff] }
  0x21   :  { %1064 = vmatpush3.bf16.msra.mxu0 %v1063_v46  ;;  %v121_v24 = vld [vmem:[%s1932_s1 + $0x330] sm:$0xff]  ;;  %v108_v28 = vld [vmem:[%s1932_s1 + $0x2c8] sm:$0xff]  ;;  %v139_v30 = vld [vmem:[%s1932_s1 + $0x3c0] sm:$0xff] }
  0x22   :  { %1098 = vmatprep.subr.bf16.mxu0 %v1097_v48  ;;  %v16_v29 = vld [vmem:[%s1931_s0 + $0x8] sm:$0xff]  ;;  %v1143_v35 = vpack.c.bf16 %v122_v25, %v121_v24  ;;  %v1113_v36 = vpack.c.bf16 %v108_v28, %v107_v27  ;;  %v91_v37 = vld [vmem:[%s1932_s1 + $0x240] sm:$0xff]  ;;  %v109_v44 = vld [vmem:[%s1932_s1 + $0x2d0] sm:$0xff] }
  0x23   :  { %1096 = vmatpush3.bf16.msra.mxu1 %v1095_v47  ;;  %v140_v31 = vld [vmem:[%s1932_s1 + $0x3c8] sm:$0xff]  ;;  %v243_v33 = vcombine.high %v16_v29, %v16_v29  ;;  %v123_v39 = vld [vmem:[%s1932_s1 + $0x340] sm:$0xff]  ;;  %v110_v45 = vld [vmem:[%s1932_s1 + $0x2d8] sm:$0xff] }
  0x24   :  { %1130 = vmatprep.subr.bf16.mxu1 %v1129_v52  ;;  %364 = vmatmul.mubr.f32.vlgmr.msra.gmra.mrb[0].mxu0 %v233_v23  ;;  %v90_v23 = vld [vmem:[%s1932_s1 + $0x238] sm:$0xff]  ;;  %v92_v38 = vld [vmem:[%s1932_s1 + $0x248] sm:$0xff]  ;;  %v1145_v42 = vpack.c.bf16 %v140_v31, %v139_v30  ;;  %v141_v46 = vld [vmem:[%s1932_s1 + $0x3d0] sm:$0xff]  ;;  %v1117_v51 = vpack.c.bf16 %v110_v45, %v109_v44 }
  0x25   :  { %1100 = vmatpush3.bf16.msra.mxu0 %v1099_v58  ;;  %v1111_v34 = vpack.c.bf16 %v90_v23, %v89_v20  ;;  %v1613_v41 = vrot.slane %v243_v33, %v1432_v10  ;;  %v124_v43 = vld [vmem:[%s1932_s1 + $0x348] sm:$0xff]  ;;  %v142_v47 = vld [vmem:[%s1932_s1 + $0x3d8] sm:$0xff]  ;;  %v1115_v49 = vpack.c.bf16 %v92_v38, %v91_v37  ;;  %v93_v52 = vld [vmem:[%s1932_s1 + $0x250] sm:$0xff] }
  0x26   :  { %434 = vmatmul.mubr.f32.vlgmr.msra.gmra.mrb[0].mxu1 %v240_v32  ;;  %1102 = vmatprep.subr.bf16.mxu0 %v1101_v60  ;;  %v1599_v32 = vrot.slane %v16_v29, %v1432_v10  ;;  %v1147_v50 = vpack.c.bf16 %v124_v43, %v123_v39  ;;  %v94_v53 = vld [vmem:[%s1932_s1 + $0x258] sm:$0xff]  ;;  %v125_v54 = vld [vmem:[%s1932_s1 + $0x350] sm:$0xff]  ;;  %v1149_v55 = vpack.c.bf16 %v142_v47, %v141_v46  ;;  %v111_v57 = vld [vmem:[%s1932_s1 + $0x2e0] sm:$0xff] }
  0x27   :  { %1132 = vmatpush3.bf16.msra.mxu1 %v1131_v59  ;;  %v259_v48 = vcombine.high %v1613_v41, %v1613_v41  ;;  %v126_v56 = vld [vmem:[%s1932_s1 + $0x358] sm:$0xff]  ;;  %v112_v58 = vld [vmem:[%s1932_s1 + $0x2e8] sm:$0xff]  ;;  %v143_v59 = vld [vmem:[%s1932_s1 + $0x3e0] sm:$0xff]  ;;  %v1119_v61 = vpack.c.bf16 %v94_v53, %v93_v52 }
  0x28   :  { %1134 = vmatprep.subr.bf16.mxu1 %v1133_v0  ;;  %v258_v40 = vcombine.high %v1599_v32, %v1599_v32  ;;  %v144_v60 = vld [vmem:[%s1932_s1 + $0x3e8] sm:$0xff]  ;;  %v1151_v62 = vpack.c.bf16 %v126_v56, %v125_v54  ;;  %v1121_v63 = vpack.c.bf16 %v112_v58, %v111_v57  ;;  %v95_v0 = vld [vmem:[%s1932_s1 + $0x260] sm:$0xff]  ;;  %v113_v5 = vld [vmem:[%s1932_s1 + $0x2f0] sm:$0xff] }
  0x29   :  { %1104 = vmatpush3.bf16.msra.mxu0 %v1103_v6  ;;  %573 = vmatprep.mubr.f32.mxu1 %v259_v48  ;;  %v96_v1 = vld [vmem:[%s1932_s1 + $0x268] sm:$0xff]  ;;  %v127_v2 = vld [vmem:[%s1932_s1 + $0x360] sm:$0xff]  ;;  %v1153_v3 = vpack.c.bf16 %v144_v60, %v143_v59  ;;  %v114_v6 = vld [vmem:[%s1932_s1 + $0x2f8] sm:$0xff] }
  0x2a   :  { %1106 = vmatprep.subr.bf16.mxu0 %v1105_v8  ;;  %503 = vmatprep.mubr.f32.mxu0 %v258_v40  ;;  %v128_v4 = vld [vmem:[%s1932_s1 + $0x368] sm:$0xff]  ;;  %v146_v8 = vld [vmem:[%s1932_s1 + $0x3f8] sm:$0xff]  ;;  %v1123_v9 = vpack.c.bf16 %v96_v1, %v95_v0  ;;  %v1125_v12 = vpack.c.bf16 %v114_v6, %v113_v5  ;;  %v129_v15 = vld [vmem:[%s1932_s1 + $0x370] sm:$0xff] }
  0x2b   :  { %1136 = vmatpush3.bf16.msra.mxu1 %v1135_v7  ;;  %v145_v7 = vld [vmem:[%s1932_s1 + $0x3f0] sm:$0xff]  ;;  %v1155_v11 = vpack.c.bf16 %v128_v4, %v127_v2  ;;  %v98_v14 = vld [vmem:[%s1932_s1 + $0x278] sm:$0xff]  ;;  %v163_v18 = vld [vmem:[%s1932_s1 + $0x480] sm:$0xff] }
  0x2c   :  { %1138 = vmatprep.subr.bf16.mxu1 %v1137_v13  ;;  %v97_v13 = vld [vmem:[%s1932_s1 + $0x270] sm:$0xff]  ;;  %v1157_v16 = vpack.c.bf16 %v146_v8, %v145_v7  ;;  %v130_v17 = vld [vmem:[%s1932_s1 + $0x378] sm:$0xff]  ;;  %v195_v20 = vld [vmem:[%s1932_s1 + $0x580] sm:$0xff] }
  0x2d   :  { %1108 = vmatpush3.bf16.msra.mxu0 %v1107_v19  ;;  %v164_v19 = vld [vmem:[%s1932_s1 + $0x488] sm:$0xff]  ;;  %v147_v23 = vld [vmem:[%s1932_s1 + $0x400] sm:$0xff]  ;;  %v1159_v24 = vpack.c.bf16 %v130_v17, %v129_v15  ;;  %v165_v30 = vld [vmem:[%s1932_s1 + $0x490] sm:$0xff] }
  0x2e   :  { %1110 = vmatprep.subr.bf16.mxu0 %v1109_v22  ;;  %v1127_v22 = vpack.c.bf16 %v98_v14, %v97_v13  ;;  %v1161_v25 = vpack.c.bf16 %v164_v19, %v163_v18  ;;  %v179_v27 = vld [vmem:[%s1932_s1 + $0x500] sm:$0xff]  ;;  %v180_v28 = vld [vmem:[%s1932_s1 + $0x508] sm:$0xff]  ;;  %v166_v31 = vld [vmem:[%s1932_s1 + $0x498] sm:$0xff] }
  0x2f   :  { %1140 = vmatpush3.bf16.msra.mxu1 %v1139_v21  ;;  %v196_v21 = vld [vmem:[%s1932_s1 + $0x588] sm:$0xff]  ;;  %v197_v33 = vld [vmem:[%s1932_s1 + $0x590] sm:$0xff]  ;;  %v1165_v38 = vpack.c.bf16 %v166_v31, %v165_v30  ;;  %v150_v40 = vld [vmem:[%s1932_s1 + $0x418] sm:$0xff] }
  0x30   :  { %1142 = vmatprep.subr.bf16.mxu1 %v1141_v26  ;;  %v148_v26 = vld [vmem:[%s1932_s1 + $0x408] sm:$0xff]  ;;  %v1193_v29 = vpack.c.bf16 %v196_v21, %v195_v20  ;;  %v17_v37 = vld [vmem:[%s1931_s0 + $0x10] sm:$0xff]  ;;  %v182_v46 = vld [vmem:[%s1932_s1 + $0x518] sm:$0xff] }
  0x31   :  { %1112 = vmatpush3.bf16.msra.mxu0 %v1111_v34  ;;  %v198_v34 = vld [vmem:[%s1932_s1 + $0x598] sm:$0xff]  ;;  %v149_v39 = vld [vmem:[%s1932_s1 + $0x410] sm:$0xff]  ;;  %v1741_v43 = vrot.slane %v17_v37, %v1432_v10  ;;  %v260_v44 = vcombine.high %v17_v37, %v17_v37  ;;  %v167_v47 = vld [vmem:[%s1932_s1 + $0x4a0] sm:$0xff] }
  0x32   :  { %1114 = vmatprep.subr.bf16.mxu0 %v1113_v36  ;;  %v1195_v36 = vpack.c.bf16 %v180_v28, %v179_v27  ;;  %v1197_v45 = vpack.c.bf16 %v198_v34, %v197_v33  ;;  %v168_v48 = vld [vmem:[%s1932_s1 + $0x4a8] sm:$0xff] }
  0x33   :  { %1144 = vmatpush3.bf16.msra.mxu1 %v1143_v35  ;;  %v1163_v35 = vpack.c.bf16 %v148_v26, %v147_v23  ;;  %v1762_v52 = vrot.slane %v260_v44, %v1432_v10 }
  0x34   :  { %1146 = vmatprep.subr.bf16.mxu1 %v1145_v42  ;;  %v181_v42 = vld [vmem:[%s1932_s1 + $0x510] sm:$0xff] }
  0x35   :  { %1116 = vmatpush3.bf16.msra.mxu0 %v1115_v49  ;;  %v199_v49 = vld [vmem:[%s1932_s1 + $0x5a0] sm:$0xff] }
  0x36   :  { %1118 = vmatprep.subr.bf16.mxu0 %v1117_v51  ;;  %v275_v51 = vcombine.high %v1741_v43, %v1741_v43 }
  0x37   :  { %1148 = vmatpush3.bf16.msra.mxu1 %v1147_v50  ;;  %v200_v50 = vld [vmem:[%s1932_s1 + $0x5a8] sm:$0xff] }
  0x38   :  { %1150 = vmatprep.subr.bf16.mxu1 %v1149_v55 }
  0x39   :  { %1120 = vmatpush3.bf16.msra.mxu0 %v1119_v61 }
  0x3a   :  { %1122 = vmatprep.subr.bf16.mxu0 %v1121_v63 }
  0x3b   :  { %1152 = vmatpush3.bf16.msra.mxu1 %v1151_v62 }
  0x3c   :  { %1154 = vmatprep.subr.bf16.mxu1 %v1153_v3 }
  0x3d   :  { %1124 = vmatpush3.bf16.msra.mxu0 %v1123_v9 }
  0x3e   :  { %1126 = vmatprep.subr.bf16.mxu0 %v1125_v12 }
  0x3f   :  { %1156 = vmatpush3.bf16.msra.mxu1 %v1155_v11 }
  0x40   :  { %1158 = vmatprep.subr.bf16.mxu1 %v1157_v16 }
  0x41   :  { %1128 = vmatpush3.bf16.msra.mxu0 %v1127_v22 }
  0x42   :  { %1162 = vmatprep.subr.bf16.mxu0 %v1161_v25 }
  0x43   :  { %1160 = vmatpush3.bf16.msra.mxu1 %v1159_v24 }
  0x44   :  { %1194 = vmatprep.subr.bf16.mxu1 %v1193_v29  ;;  %504 = vmatmul.mubr.f32.vlgmr.msra.gmra.mrb[2].mxu0 %v1599_v32 }
  0x45   :  { %8 = vsyncpa [#allocation3], 0  ;;  %1164 = vmatpush3.bf16.msra.mxu0 %v1163_v35  ;;  %v1167_v53 = vpack.c.bf16 %v150_v40, %v149_v39  ;;  %v1199_v32 = vpack.c.bf16 %v182_v46, %v181_v42  ;;  %v1169_v54 = vpack.c.bf16 %v168_v48, %v167_v47  ;;  %v151_v55 = vld [vmem:[%s1932_s1 + $0x420] sm:$0xff]  ;;  %v152_v56 = vld [vmem:[%s1932_s1 + $0x428] sm:$0xff]  ;;  %v1201_v57 = vpack.c.bf16 %v200_v50, %v199_v49 }
  0x46   :  { %574 = vmatmul.mubr.f32.vlgmr.msra.gmra.mrb[2].mxu1 %v1613_v41  ;;  %1166 = vmatprep.subr.bf16.mxu0 %v1165_v38  ;;  %v183_v10 = vld [vmem:[%s1932_s1 + $0x520] sm:$0xff]  ;;  %v276_v41 = vcombine.high %v1762_v52, %v1762_v52  ;;  %v184_v58 = vld [vmem:[%s1932_s1 + $0x528] sm:$0xff]  ;;  %v169_v59 = vld [vmem:[%s1932_s1 + $0x4b0] sm:$0xff]  ;;  %v1171_v63 = vpack.c.bf16 %v152_v56, %v151_v55  ;;  %vm1265_vm0 = vmmov 0   ;;  %vm296_vm1 = vcmask 261120  }
  0x47   :  { %1196 = vmatpush3.bf16.msra.mxu1 %v1195_v36  ;;  %v170_v60 = vld [vmem:[%s1932_s1 + $0x4b8] sm:$0xff]  ;;  %643 = vmatprep.mubr.f32.mxu0 %v275_v51  ;;  %v201_v61 = vld [vmem:[%s1932_s1 + $0x5b0] sm:$0xff]  ;;  %v1203_v0 = vpack.c.bf16 %v184_v58, %v183_v10  ;;  %v171_v7 = vld [vmem:[%s1932_s1 + $0x4c0] sm:$0xff] }
  0x48   :  { %1198 = vmatprep.subr.bf16.mxu1 %v1197_v45  ;;  %v202_v62 = vld [vmem:[%s1932_s1 + $0x5b8] sm:$0xff]  ;;  %713 = vmatprep.mubr.f32.mxu1 %v276_v41  ;;  %v1173_v1 = vpack.c.bf16 %v170_v60, %v169_v59  ;;  %v153_v2 = vld [vmem:[%s1932_s1 + $0x430] sm:$0xff]  ;;  %v172_v8 = vld [vmem:[%s1932_s1 + $0x4c8] sm:$0xff] }
  0x49   :  { %1168 = vmatpush3.bf16.msra.mxu0 %v1167_v53  ;;  %v154_v3 = vld [vmem:[%s1932_s1 + $0x438] sm:$0xff]  ;;  %v185_v4 = vld [vmem:[%s1932_s1 + $0x530] sm:$0xff]  ;;  %v1205_v5 = vpack.c.bf16 %v202_v62, %v201_v61  ;;  %v203_v9 = vld [vmem:[%s1932_s1 + $0x5c0] sm:$0xff]  ;;  %v1177_v14 = vpack.c.bf16 %v172_v8, %v171_v7  ;;  %v1264_v62 = vmov 0.0|0.0  }
  0x4a   :  { %1170 = vmatprep.subr.bf16.mxu0 %v1169_v54  ;;  %v186_v6 = vld [vmem:[%s1932_s1 + $0x538] sm:$0xff]  ;;  %v204_v11 = vld [vmem:[%s1932_s1 + $0x5c8] sm:$0xff]  ;;  %v1175_v12 = vpack.c.bf16 %v154_v3, %v153_v2  ;;  %v155_v15 = vld [vmem:[%s1932_s1 + $0x440] sm:$0xff]  ;;  %v1266_v2 = vmov 0.0  }
  0x4b   :  { %1200 = vmatpush3.bf16.msra.mxu1 %v1199_v32  ;;  %v1207_v13 = vpack.c.bf16 %v186_v6, %v185_v4  ;;  %v156_v16 = vld [vmem:[%s1932_s1 + $0x448] sm:$0xff]  ;;  %v187_v17 = vld [vmem:[%s1932_s1 + $0x540] sm:$0xff]  ;;  %v1209_v18 = vpack.c.bf16 %v204_v11, %v203_v9  ;;  %v173_v20 = vld [vmem:[%s1932_s1 + $0x4d0] sm:$0xff] }
  0x4c   :  { %1202 = vmatprep.subr.bf16.mxu1 %v1201_v57  ;;  %v188_v19 = vld [vmem:[%s1932_s1 + $0x548] sm:$0xff]  ;;  %v174_v21 = vld [vmem:[%s1932_s1 + $0x4d8] sm:$0xff]  ;;  %v205_v22 = vld [vmem:[%s1932_s1 + $0x5d0] sm:$0xff]  ;;  %v1179_v24 = vpack.c.bf16 %v156_v16, %v155_v15 }
  0x4d   :  { %1172 = vmatpush3.bf16.msra.mxu0 %v1171_v63  ;;  %v206_v23 = vld [vmem:[%s1932_s1 + $0x5d8] sm:$0xff]  ;;  %v1211_v25 = vpack.c.bf16 %v188_v19, %v187_v17  ;;  %v1181_v26 = vpack.c.bf16 %v174_v21, %v173_v20  ;;  %v157_v27 = vld [vmem:[%s1932_s1 + $0x450] sm:$0xff]  ;;  %v175_v33 = vld [vmem:[%s1932_s1 + $0x4e0] sm:$0xff] }
  0x4e   :  { %1174 = vmatprep.subr.bf16.mxu0 %v1173_v1  ;;  %v158_v28 = vld [vmem:[%s1932_s1 + $0x458] sm:$0xff]  ;;  %v189_v29 = vld [vmem:[%s1932_s1 + $0x550] sm:$0xff]  ;;  %v1213_v30 = vpack.c.bf16 %v206_v23, %v205_v22  ;;  %v176_v34 = vld [vmem:[%s1932_s1 + $0x4e8] sm:$0xff] }
  0x4f   :  { %1204 = vmatpush3.bf16.msra.mxu1 %v1203_v0  ;;  %v190_v31 = vld [vmem:[%s1932_s1 + $0x558] sm:$0xff]  ;;  %v207_v35 = vld [vmem:[%s1932_s1 + $0x5e0] sm:$0xff]  ;;  %v208_v36 = vld [vmem:[%s1932_s1 + $0x5e8] sm:$0xff]  ;;  %v1183_v37 = vpack.c.bf16 %v158_v28, %v157_v27  ;;  %v1185_v39 = vpack.c.bf16 %v176_v34, %v175_v33 }
  0x50   :  { %1206 = vmatprep.subr.bf16.mxu1 %v1205_v5  ;;  %v1215_v38 = vpack.c.bf16 %v190_v31, %v189_v29  ;;  %v159_v40 = vld [vmem:[%s1932_s1 + $0x460] sm:$0xff]  ;;  %v160_v42 = vld [vmem:[%s1932_s1 + $0x468] sm:$0xff]  ;;  %v1217_v45 = vpack.c.bf16 %v208_v36, %v207_v35  ;;  %v177_v47 = vld [vmem:[%s1932_s1 + $0x4f0] sm:$0xff] }
  0x51   :  { %1176 = vmatpush3.bf16.msra.mxu0 %v1175_v12  ;;  %v191_v44 = vld [vmem:[%s1932_s1 + $0x560] sm:$0xff]  ;;  %v192_v46 = vld [vmem:[%s1932_s1 + $0x568] sm:$0xff]  ;;  %v178_v48 = vld [vmem:[%s1932_s1 + $0x4f8] sm:$0xff]  ;;  %v1187_v51 = vpack.c.bf16 %v160_v42, %v159_v40 }
  0x52   :  { %1178 = vmatprep.subr.bf16.mxu0 %v1177_v14  ;;  %v209_v49 = vld [vmem:[%s1932_s1 + $0x5f0] sm:$0xff]  ;;  %v210_v50 = vld [vmem:[%s1932_s1 + $0x5f8] sm:$0xff]  ;;  %v1219_v53 = vpack.c.bf16 %v192_v46, %v191_v44  ;;  %v1189_v32 = vpack.c.bf16 %v178_v48, %v177_v47  ;;  %v211_v59 = vld [vmem:[%s1932_s1 + $0x600] sm:$0xff] }
  0x53   :  { %1208 = vmatpush3.bf16.msra.mxu1 %v1207_v13  ;;  %v161_v54 = vld [vmem:[%s1932_s1 + $0x470] sm:$0xff]  ;;  %v162_v55 = vld [vmem:[%s1932_s1 + $0x478] sm:$0xff]  ;;  %v1221_v56 = vpack.c.bf16 %v210_v50, %v209_v49  ;;  %v212_v60 = vld [vmem:[%s1932_s1 + $0x608] sm:$0xff] }
  0x54   :  { %1210 = vmatprep.subr.bf16.mxu1 %v1209_v18  ;;  %v193_v10 = vld [vmem:[%s1932_s1 + $0x570] sm:$0xff]  ;;  %v194_v41 = vld [vmem:[%s1932_s1 + $0x578] sm:$0xff]  ;;  %v1191_v57 = vpack.c.bf16 %v162_v55, %v161_v54  ;;  %v1226_v61 = vpack.c.bf16 %v212_v60, %v211_v59 }
  0x55   :  { %1180 = vmatpush3.bf16.msra.mxu0 %v1179_v24  ;;  %v1223_v58 = vpack.c.bf16 %v194_v41, %v193_v10  ;;  %v213_v63 = vld [vmem:[%s1932_s1 + $0x610] sm:$0xff]  ;;  %v214_v0 = vld [vmem:[%s1932_s1 + $0x618] sm:$0xff] }
  0x56   :  { %1182 = vmatprep.subr.bf16.mxu0 %v1181_v26  ;;  %v1229_v1 = vpack.c.bf16 %v214_v0, %v213_v63  ;;  %v805_v3 = vld.sshfl [vmem:[%s1931_s0 + $0x18] sm:$0x3 pattern:$0x76325410]  ;;  %s1267_s0 = smov [#allocation2]  }
  0x57   :  { %1212 = vmatpush3.bf16.msra.mxu1 %v1211_v25 }
  0x58   :  { %1214 = vmatprep.subr.bf16.mxu1 %v1213_v30 }
  0x59   :  { %1184 = vmatpush3.bf16.msra.mxu0 %v1183_v37 }
  0x5a   :  { %1186 = vmatprep.subr.bf16.mxu0 %v1185_v39 }
  0x5b   :  { %1216 = vmatpush3.bf16.msra.mxu1 %v1215_v38 }
  0x5c   :  { %1218 = vmatprep.subr.bf16.mxu1 %v1217_v45 }
  0x5d   :  { %1188 = vmatpush3.bf16.msra.mxu0 %v1187_v51 }
  0x5e   :  { %1190 = vmatprep.subr.bf16.mxu0 %v1189_v32 }
  0x5f   :  { %1220 = vmatpush3.bf16.msra.mxu1 %v1219_v53 }
  0x60   :  { %1222 = vmatprep.subr.bf16.mxu1 %v1221_v56 }
  0x61   :  { %1192 = vmatpush3.bf16.msra.mxu0 %v1191_v57 }
  0x62   :  { %1225 = vmatprep.subr.bf16.mxu0 %v1264_v62 }
  0x63   :  { %1224 = vmatpush3.bf16.msra.mxu1 %v1223_v58 }
  0x64   :  { %644 = vmatmul.mubr.f32.vlgmr.msra.gmra.mrb[4].mxu0 %v1741_v43  ;;  %v804_v43 = vld [vmem:[%s1933_s2] ss:$0 sm:$0xff]  ;;  %s796_s2 = sshll.u32 %s1267_s0, 4  ;;  %s797_s2 = int_to_ptr.vmem [resolvable:$true] %s796_s2 }
  0x65   :  { %1227 = vmatpush3.bf16.msra.mxu0 %v1226_v61  ;;  %1030 = vmatprep.mubr.msk.f32.mxu0 %vm1265_vm0, %v1266_v2  ;;  %s1239_s8 = scalar_lea.vmem %s797_s2, 32  ;;  %p1244_p1 = scmp.lt.s32.totalorder %s797_s2, %s797_s2 }
  0x66   :  { %714 = vmatmul.mubr.f32.vlgmr.msra.gmra.mrb[4].mxu1 %v1762_v52  ;;  %1228 = vmatprep.subr.bf16.mxu0 %v1264_v62  ;;  %p1240_p0 = scmp.ne.s32.totalorder %s797_s2, %s1239_s8  ;;  %p1245_p2 = scmp.lt.s32.totalorder %s1239_s8, %s1239_s8 }
  0x68   :  { %p1246_p3 = por %p1245_p2, %p1244_p1 }
  0x69   :  { %1230 = vmatpush3.bf16.msra.mxu0 %v1229_v1 }
  0x6a   :  { %p1247_p4 = pnand %p1246_p3, %p1240_p0 }
  0x6c   :  { %1031 = vmatmul.mubr.msk.f32.vlgmr.msra.gmra.mrb[6].mxu0 %vm296_vm1, %v805_v3 }
  0xf7   :  { %v839_v4 = vpop.f32.mrb[0].mxu0 }
  0xf8   :  { %v840_v5 = vpop.f32.mrb[1].mxu0 }
  0xf9   :  { %v874_v6 = vpop.f32.mrb[0].mxu1  ;;  %v841_v52 = vadd.f32 %v840_v5, %v839_v4 }
  0xfa   :  { %v875_v7 = vpop.f32.mrb[1].mxu1 }
  0xfb   :  { %v876_v8 = vadd.f32 %v875_v7, %v874_v6  ;;  %v366_v9 = vadd.f32 %v841_v52, %v804_v43 }
  0xfd   :  { %v436_v11 = vadd.f32 %v876_v8, %v366_v9 }
 0x117   :  { %v909_v12 = vpop.f32.mrb[2].mxu0 }
 0x118   :  { %v910_v13 = vpop.f32.mrb[3].mxu0 }
 0x119   :  { %v944_v14 = vpop.f32.mrb[2].mxu1  ;;  %v911_v15 = vadd.f32 %v910_v13, %v909_v12 }
 0x11a   :  { %v945_v16 = vpop.f32.mrb[3].mxu1 }
 0x11b   :  { %v946_v17 = vadd.f32 %v945_v16, %v944_v14  ;;  %v506_v18 = vadd.f32 %v911_v15, %v436_v11 }
 0x11d   :  { %v576_v19 = vadd.f32 %v946_v17, %v506_v18 }
 0x137   :  { %v979_v20 = vpop.f32.mrb[4].mxu0 }
 0x138   :  { %v980_v21 = vpop.f32.mrb[5].mxu0 }
 0x139   :  { %v1014_v22 = vpop.f32.mrb[4].mxu1  ;;  %v981_v23 = vadd.f32 %v980_v21, %v979_v20 }
 0x13a   :  { %v1015_v24 = vpop.f32.mrb[5].mxu1 }
 0x13b   :  { %v1016_v25 = vadd.f32 %v1015_v24, %v1014_v22  ;;  %v646_v26 = vadd.f32 %v981_v23, %v576_v19 }
 0x13d   :  { %v716_v27 = vadd.f32 %v1016_v25, %v646_v26 }
 0x13f   :  { %v785_v28 = vpop.f32.mrb[6].mxu0 }
 0x140   :  { %v786_v29 = vadd.f32 %v785_v28, %v716_v27  ;;  %v1032_v30 = vpop.f32.mrb[7].mxu0 }
 0x142   :  { %789 = vst [vmem:[#allocation2] sm:$0x3] %v786_v29 }
 0x143   :  { %1250 = shalt.err (!%p1247_p4)
}
 0x144   :  { %s1251_s11 = scalar_lea.hbm %s1934_s3, 32 }
 0x145   :  { %p1252_p5 = scmp.ne.s32.totalorder %s1934_s3, %s1251_s11  ;;  %p1255_p6 = scmp.lt.u32.totalorder %s1251_s11, %s1934_s3 }
 0x147   :  { %p1257_p7 = pnand %p1255_p6, %p1252_p5 }
 0x149   :  { %1260 = shalt.err (!%p1257_p7)
}
 0x14a   :  { %799 = dma.vmem_to_hbm [thread:$0]  %s797_s2, 32, %s1934_s3, [#allocation3]  }
 0x14b   :  { %1261 = dma.done.wait [#allocation3], 32  }
 0x14c   :  { %1262 = vsyncadd [#allocation3], 4294967264 }
 0x14d   :  { %803 = vsyncpa [#allocation3], 1 }

</bundles_post_ra>
